<compile_context>
chip_gen: v5e
topology: v5e:2x2
jax: 0.10.0
libtpu: 0.0.40
codegen_flags: <defaults>
</compile_context>

<pallas_src>
import functools

import jax
import jax.numpy as jnp
from jax.experimental import pallas as pl
from jax.experimental.pallas import tpu as pltpu

# ----------------------------- configuration --------------------------------
N_LAYERS = 2          # n_layers
RNN_INPUT_SIZE = 4    # N_i^d  (dynamic input size)
RNN_N_FEATURES = 32   # GRU hidden size
META_INPUT_SIZE = 2   # N_i^m  (metadata input size)
META_N_FEATURES = 32  # metadata feature size
BATCH = 2
SEQ = 8

LANES = 128           # lane width of the packed weight tile
SUBLANES = 8          # f32 sublane tile -> padded batch size


# ------------------------------- kernel -------------------------------------
def _one_step_kernel(data_ref, meta_ref, h0_ref, wp_ref, rain_ref, hout_ref,
                     *, compute_dtype):
    SB, Di = data_ref.shape            # S*BP rows (time-major, batch padded to 8)
    BP, Dm = meta_ref.shape
    S = SB // BP
    H = h0_ref.shape[2]
    H2, H3 = 2 * H, 3 * H
    cdt = compute_dtype                # bf16 for MXU operands (f32 validation path)

    # ---- unpack the single packed weight tile (static slices) ---------------
    r = 0
    whh0 = wp_ref[r:r + H, :H3]; r += H            # [H,3H]  recurrent, layer 0
    whh1 = wp_ref[r:r + H, :H3]; r += H            # [H,3H]  recurrent, layer 1
    wih0m = wp_ref[r:r + H, :H3]; r += H           # [Fm,3H] metadata part of layer-0 ih
    wih1 = wp_ref[r:r + H, :H3]; r += H            # [H,3H]  layer-1 input weights
    wih0x = wp_ref[r:r + Di, :H3]; r += Di         # [Di,3H] data part (norm folded)
    w_meta = wp_ref[r:r + Dm, :H]; r += Dm         # [Dm,Fm] metadata fc (norm folded)
    wrh_h = wp_ref[r:r + 1, :H]; r += 1            # [1,H]   rain-head (hidden part)
    wrh_m = wp_ref[r:r + 1, :H]; r += 1            # [1,Fm]  rain-head (metadata part)
    bih0 = wp_ref[r:r + 1, :H3]; r += 1            # b_ih_l0 + norm fold + b_hh_l0[r,z]
    bih1 = wp_ref[r:r + 1, :H3]; r += 1            # b_ih_l1 + b_hh_l1[r,z]
    bhh0n = wp_ref[r:r + 1, :H]; r += 1            # b_hh_l0[n]
    bhh1n = wp_ref[r:r + 1, :H]; r += 1            # b_hh_l1[n]
    bmeta = wp_ref[r:r + 1, :H]; r += 1            # b_meta + meta-norm fold
    brh = wp_ref[r:r + 1, 0:1]                     # rain-head bias

    # ---- metadata path (one-shot, off the serial chain -> keep f32) ---------
    mf = jnp.maximum(
        jnp.dot(meta_ref[...], w_meta, preferred_element_type=jnp.float32) + bmeta,
        0.0)                                                        # [BP,Fm]
    c0 = jnp.dot(mf, wih0m, preferred_element_type=jnp.float32) + bih0   # [BP,3H]
    rc = jnp.sum(mf * wrh_m, axis=1, keepdims=True) + brh                # [BP,1]

    # ---- layer-0 input gates for ALL timesteps: one MXU call ----------------
    gi0_all = jnp.dot(data_ref[...].astype(cdt), wih0x.astype(cdt),
                      preferred_element_type=jnp.float32)                # [SB,3H]

    whh0_c = whh0.astype(cdt)
    whh1_c = whh1.astype(cdt)

    def cell(gi, h, whh_c, bhhn):
        # PyTorch GRU, gate order (r,z,n). b_ih + b_hh[r,z] are already in `gi`;
        # only b_hh[n] stays inside r*(.). h' = (1-z)*n + z*h == n + z*(h-n).
        gh = jnp.dot(h.astype(cdt), whh_c, preferred_element_type=jnp.float32)
        rz = jax.nn.sigmoid(gi[:, :H2] + gh[:, :H2])
        rg, zg = rz[:, :H], rz[:, H:]
        ng = jnp.tanh(gi[:, H2:] + rg * (gh[:, H2:] + bhhn))
        return ng + zg * (h - ng)

    # ---- layer-0 recurrence: per-step states stay in registers --------------
    h = h0_ref[0]
    hs0 = []
    for t in range(S):
        h = cell(gi0_all[t * BP:(t + 1) * BP, :] + c0, h, whh0_c, bhh0n)
        hs0.append(h)
    hout_ref[0] = h
    h0_all = jnp.concatenate(hs0, axis=0)                                # [SB,H]

    # ---- layer-1 input gates for ALL timesteps: one MXU call ----------------
    gi1_all = jnp.dot(h0_all.astype(cdt), wih1.astype(cdt),
                      preferred_element_type=jnp.float32) + bih1

    # ---- layer-1 recurrence --------------------------------------------------
    h = h0_ref[1]
    hs1 = []
    for t in range(S):
        h = cell(gi1_all[t * BP:(t + 1) * BP, :], h, whh1_c, bhh1n)
        hs1.append(h)
    hout_ref[1] = h
    h1_all = jnp.concatenate(hs1, axis=0)                                # [SB,H]

    # ---- rain head: batched lane-reduction + ReLU, single store --------------
    rc_all = jnp.concatenate([rc] * S, axis=0)                           # [SB,1]
    rain_ref[...] = jnp.maximum(
        jnp.sum(h1_all * wrh_h, axis=1, keepdims=True) + rc_all, 0.0)


# ------------------------------- wrapper -------------------------------------
def one_step_network(data, metadata, state, params, *,
                     compute_dtype=jnp.bfloat16):
    """data: [B,S,Di] f32, metadata: [B,Dm] f32, state: [L,B,H] f32.

    Returns (rain [B,S,1], state [L,B,H]) — same convention as the PyTorch module.
    """
    B, S, Di = data.shape
    L, _, H = state.shape
    Dm = metadata.shape[1]
    Fm = params["w_meta"].shape[1]
    assert L == N_LAYERS
    assert Fm == H, "kernel packing assumes metadata_n_features == rnn_n_features"
    f32 = jnp.float32
    BP = max(SUBLANES, -(-B // SUBLANES) * SUBLANES)   # batch padded to sublane tile

    # ---- fold InputNormalization into the first Linear layers (wrapper algebra)
    inv_std_d = 1.0 / params["std_d"]                  # [1, Di]
    inv_std_m = 1.0 / params["std_m"]                  # [1, Dm]
    wih0 = params["w_ih_l0"]                           # [Di+Fm, 3H]
    wih0x, wih0m = wih0[:Di], wih0[Di:]
    wih0x_f = wih0x * inv_std_d[0][:, None]            # row-scale by 1/std_d
    w_meta_f = params["w_meta"] * inv_std_m[0][:, None]
    b_meta_f = params["b_meta"] - (params["mean_m"] * inv_std_m) @ params["w_meta"]

    # Fold the r,z parts of b_hh into the precomputed input gates; only the n
    # part of b_hh must stay inside r*(.) in the GRU cell.
    def rz_only(bhh):
        return jnp.concatenate([bhh[:, :2 * H], jnp.zeros((1, H), f32)], axis=1)

    bih0_f = (params["b_ih_l0"]
              - (params["mean_d"] * inv_std_d) @ wih0x
              + rz_only(params["b_hh_l0"]))
    bih1_f = params["b_ih_l1"] + rz_only(params["b_hh_l1"])

    # ---- ONE lane-dense packed weight tile (single DMA, unmasked 128 lanes) ---
    def rows(x):
        return jnp.pad(x, ((0, 0), (0, LANES - x.shape[1])))

    wrh = params["w_rh"]                               # [H+Fm, 1]
    wp = jnp.concatenate([
        rows(params["w_hh_l0"]), rows(params["w_hh_l1"]),
        rows(wih0m), rows(params["w_ih_l1"]),
        rows(wih0x_f), rows(w_meta_f),
        rows(wrh[:H].T), rows(wrh[H:].T),
        rows(bih0_f), rows(bih1_f),
        rows(params["b_hh_l0"][:, 2 * H:]), rows(params["b_hh_l1"][:, 2 * H:]),
        rows(b_meta_f), rows(params["b_rh"]),
    ], axis=0)
    wp = jnp.pad(wp, ((0, (-wp.shape[0]) % SUBLANES), (0, 0)))   # -> [144, 128]

    # ---- time-major, batch padded to the 8-row sublane tile, flattened --------
    # (one tiny fused pad/transpose under jit; pad rows compute garbage that is
    #  stripped from the outputs below)
    data_tm = jnp.pad(jnp.transpose(data, (1, 0, 2)),
                      ((0, 0), (0, BP - B), (0, 0)))             # [S, BP, Di]
    data_flat = data_tm.reshape(S * BP, Di)                      # row = t*BP + b
    meta_p = jnp.pad(metadata, ((0, BP - B), (0, 0)))            # [BP, Dm]
    state_p = jnp.pad(state, ((0, 0), (0, BP - B), (0, 0)))      # [L, BP, H]

    vmem = pl.BlockSpec(memory_space=pltpu.MemorySpace.VMEM)
    rain_flat, h_out = pl.pallas_call(
        functools.partial(_one_step_kernel, compute_dtype=compute_dtype),
        out_shape=(jax.ShapeDtypeStruct((S * BP, 1), f32),
                   jax.ShapeDtypeStruct((L, BP, H), f32)),
        in_specs=[vmem] * 4,
        out_specs=(vmem, vmem),
        input_output_aliases={2: 1},        # state_p  ->  h_out (same shape/dtype)
    )(data_flat, meta_p, state_p, wp)

    rain = jnp.transpose(rain_flat.reshape(S, BP, 1)[:, :B, :], (1, 0, 2))  # [B,S,1]
    return rain, h_out[:, :B, :]


# -------------------------- pure-JAX reference -------------------------------
def one_step_network_ref(data, metadata, state, params):
    B, S, Di = data.shape
    H = params["w_hh_l0"].shape[0]
    meta_n = (metadata - params["mean_m"]) / params["std_m"]
    meta_feat = jax.nn.relu(meta_n @ params["w_meta"] + params["b_meta"])
    data_n = (data - params["mean_d"][None]) / params["std_d"][None]
    h0, h1 = state[0], state[1]

    def gru(x, h, wih, whh, bih, bhh):
        gi = x @ wih + bih
        gh = h @ whh + bhh
        r = jax.nn.sigmoid(gi[:, :H] + gh[:, :H])
        z = jax.nn.sigmoid(gi[:, H:2 * H] + gh[:, H:2 * H])
        n = jnp.tanh(gi[:, 2 * H:] + r * gh[:, 2 * H:])
        return (1.0 - z) * n + z * h

    rains = []
    for t in range(S):
        x = jnp.concatenate([data_n[:, t, :], meta_feat], axis=-1)
        h0 = gru(x, h0, params["w_ih_l0"], params["w_hh_l0"],
                 params["b_ih_l0"], params["b_hh_l0"])
        h1 = gru(h0, h1, params["w_ih_l1"], params["w_hh_l1"],
                 params["b_ih_l1"], params["b_hh_l1"])
        feat = jnp.concatenate([h1, meta_feat], axis=-1)
        rains.append(jax.nn.relu(feat @ params["w_rh"] + params["b_rh"]))
    return jnp.stack(rains, axis=1), jnp.stack([h0, h1], axis=0)


# ----------------------------- param init ------------------------------------
def init_params(key):
    Di, Dm, H, Fm = RNN_INPUT_SIZE, META_INPUT_SIZE, RNN_N_FEATURES, META_N_FEATURES
    ks = jax.random.split(key, 16)

    def u(k, shape, scale):
        return jax.random.uniform(k, shape, jnp.float32, -scale, scale)

    sH = 1.0 / jnp.sqrt(H)
    params = {
        # InputNormalization stats (std kept strictly positive).
        "mean_d": u(ks[0], (1, Di), 1.0),
        "std_d": 0.5 + jax.random.uniform(ks[1], (1, Di), jnp.float32, 0.0, 1.0),
        "mean_m": u(ks[2], (1, Dm), 1.0),
        "std_m": 0.5 + jax.random.uniform(ks[3], (1, Dm), jnp.float32, 0.0, 1.0),
        # Backbone.fc_meta
        "w_meta": u(ks[4], (Dm, Fm), 1.0 / jnp.sqrt(Dm)),
        "b_meta": u(ks[5], (1, Fm), 1.0 / jnp.sqrt(Dm)),
        # GRU layer 0 (input = Di + Fm); PyTorch gate order r,z,n stacked on 3H.
        "w_ih_l0": u(ks[6], (Di + Fm, 3 * H), sH),
        "w_hh_l0": u(ks[7], (H, 3 * H), sH),
        "b_ih_l0": u(ks[8], (1, 3 * H), sH),
        "b_hh_l0": u(ks[9], (1, 3 * H), sH),
        # GRU layer 1 (input = H).
        "w_ih_l1": u(ks[10], (H, 3 * H), sH),
        "w_hh_l1": u(ks[11], (H, 3 * H), sH),
        "b_ih_l1": u(ks[12], (1, 3 * H), sH),
        "b_hh_l1": u(ks[13], (1, 3 * H), sH),
        # RainHead: Linear(H + Fm -> 1) + ReLU.
        "w_rh": u(ks[14], (H + Fm, 1), 1.0 / jnp.sqrt(H + Fm)),
        "b_rh": u(ks[15], (1, 1), 1.0 / jnp.sqrt(H + Fm)),
    }
    return params


# --------------------------------- main ---------------------------------------
if __name__ == "__main__":
    key = jax.random.PRNGKey(0)
    k_p, k_d, k_m = jax.random.split(key, 3)

    params = init_params(k_p)
    data = jax.random.normal(k_d, (BATCH, SEQ, RNN_INPUT_SIZE), jnp.float32)
    metadata = jax.random.normal(k_m, (BATCH, META_INPUT_SIZE), jnp.float32)
    # init_state: zeros of shape [n_layers, batch, hidden]  (GRU, enable_tn=False)
    state = jnp.zeros((N_LAYERS, BATCH, RNN_N_FEATURES), jnp.float32)

    rain_ref, h_ref = one_step_network_ref(data, metadata, state, params)

    # 1) exact-semantics path (f32 MXU operands): tight check vs the reference.
    f32_fn = jax.jit(functools.partial(one_step_network, compute_dtype=jnp.float32))
    rain32, h32 = jax.block_until_ready(f32_fn(data, metadata, state, params))
    assert rain32.shape == (BATCH, SEQ, 1)
    assert h32.shape == (N_LAYERS, BATCH, RNN_N_FEATURES)
    assert jnp.allclose(rain32, rain_ref, atol=1e-3, rtol=1e-3)
    assert jnp.allclose(h32, h_ref, atol=1e-3, rtol=1e-3)

    # 2) performance path (bf16 MXU operands, f32 accumulation + f32 gate math):
    #    bf16 rounding compounds over the 16 sequential GRU steps, so the
    #    tolerance is looser; algorithmic correctness is established by (1).
    bf16_fn = jax.jit(functools.partial(one_step_network, compute_dtype=jnp.bfloat16))
    rain16, h16 = jax.block_until_ready(bf16_fn(data, metadata, state, params))
    assert rain16.shape == (BATCH, SEQ, 1)
    assert h16.shape == (N_LAYERS, BATCH, RNN_N_FEATURES)
    assert jnp.allclose(rain16, rain_ref, atol=5e-2, rtol=5e-2)
    assert jnp.allclose(h16, h_ref, atol=5e-2, rtol=5e-2)

    print("KERNEL_OK")
</pallas_src>

<mosaic_0001>
module attributes {stable_mosaic.version = 11 : i64} {
  func.func @_one_step_kernel(%arg0: memref<64x4xf32, #tpu.memory_space<vmem>>, %arg1: memref<8x2xf32, #tpu.memory_space<vmem>>, %arg2: memref<2x8x32xf32, #tpu.memory_space<vmem>>, %arg3: memref<144x128xf32, #tpu.memory_space<vmem>>, %arg4: memref<64x1xf32, #tpu.memory_space<vmem>>, %arg5: memref<2x8x32xf32, #tpu.memory_space<vmem>>) attributes {dimension_semantics = [], scalar_prefetch = 0 : i64, scratch_operands = 0 : i64, tpu.core_type = #tpu.core_type<tc>} {
    %c0 = arith.constant 0 : index
    %c0_0 = arith.constant 0 : index
    %0 = vector.load %arg3[%c0, %c0_0] : memref<144x128xf32, #tpu.memory_space<vmem>>, vector<32x96xf32>
    %c32 = arith.constant 32 : index
    %c0_1 = arith.constant 0 : index
    %1 = vector.load %arg3[%c32, %c0_1] : memref<144x128xf32, #tpu.memory_space<vmem>>, vector<32x96xf32>
    %c64 = arith.constant 64 : index
    %c0_2 = arith.constant 0 : index
    %2 = vector.load %arg3[%c64, %c0_2] : memref<144x128xf32, #tpu.memory_space<vmem>>, vector<32x96xf32>
    %c96 = arith.constant 96 : index
    %c0_3 = arith.constant 0 : index
    %3 = vector.load %arg3[%c96, %c0_3] : memref<144x128xf32, #tpu.memory_space<vmem>>, vector<32x96xf32>
    %c128 = arith.constant 128 : index
    %c0_4 = arith.constant 0 : index
    %4 = vector.load %arg3[%c128, %c0_4] : memref<144x128xf32, #tpu.memory_space<vmem>>, vector<4x96xf32>
    %c132 = arith.constant 132 : index
    %c0_5 = arith.constant 0 : index
    %5 = vector.load %arg3[%c132, %c0_5] : memref<144x128xf32, #tpu.memory_space<vmem>>, vector<2x32xf32>
    %c134 = arith.constant 134 : index
    %c0_6 = arith.constant 0 : index
    %6 = vector.load %arg3[%c134, %c0_6] : memref<144x128xf32, #tpu.memory_space<vmem>>, vector<1x32xf32>
    %c135 = arith.constant 135 : index
    %c0_7 = arith.constant 0 : index
    %7 = vector.load %arg3[%c135, %c0_7] : memref<144x128xf32, #tpu.memory_space<vmem>>, vector<1x32xf32>
    %c136 = arith.constant 136 : index
    %c0_8 = arith.constant 0 : index
    %8 = vector.load %arg3[%c136, %c0_8] : memref<144x128xf32, #tpu.memory_space<vmem>>, vector<1x96xf32>
    %c137 = arith.constant 137 : index
    %c0_9 = arith.constant 0 : index
    %9 = vector.load %arg3[%c137, %c0_9] : memref<144x128xf32, #tpu.memory_space<vmem>>, vector<1x96xf32>
    %c138 = arith.constant 138 : index
    %c0_10 = arith.constant 0 : index
    %10 = vector.load %arg3[%c138, %c0_10] : memref<144x128xf32, #tpu.memory_space<vmem>>, vector<1x32xf32>
    %c139 = arith.constant 139 : index
    %c0_11 = arith.constant 0 : index
    %11 = vector.load %arg3[%c139, %c0_11] : memref<144x128xf32, #tpu.memory_space<vmem>>, vector<1x32xf32>
    %c140 = arith.constant 140 : index
    %c0_12 = arith.constant 0 : index
    %12 = vector.load %arg3[%c140, %c0_12] : memref<144x128xf32, #tpu.memory_space<vmem>>, vector<1x32xf32>
    %c141 = arith.constant 141 : index
    %c0_13 = arith.constant 0 : index
    %13 = vector.load %arg3[%c141, %c0_13] : memref<144x128xf32, #tpu.memory_space<vmem>>, vector<1x1xf32>
    %c0_14 = arith.constant 0 : index
    %c0_15 = arith.constant 0 : index
    %14 = vector.load %arg1[%c0_14, %c0_15] : memref<8x2xf32, #tpu.memory_space<vmem>>, vector<8x2xf32>
    %cst = arith.constant dense<0.000000e+00> : vector<8x32xf32>
    %15 = tpu.matmul %14, %5, %cst {dimension_numbers = #tpu.dot_dimension_numbers<[1], [0], [0], [1], [0, 0, 1, 1], [], []>} : vector<8x2xf32>, vector<2x32xf32>, vector<8x32xf32> -> vector<8x32xf32>
    %16 = vector.broadcast %12 : vector<1x32xf32> to vector<8x32xf32>
    %17 = arith.addf %15, %16 : vector<8x32xf32>
    %cst_16 = arith.constant 0.000000e+00 : f32
    %18 = vector.broadcast %cst_16 : f32 to vector<8x32xf32>
    %19 = arith.maximumf %17, %18 : vector<8x32xf32>
    %cst_17 = arith.constant dense<0.000000e+00> : vector<8x96xf32>
    %20 = tpu.matmul %19, %2, %cst_17 {dimension_numbers = #tpu.dot_dimension_numbers<[1], [0], [0], [1], [0, 0, 1, 1], [], []>} : vector<8x32xf32>, vector<32x96xf32>, vector<8x96xf32> -> vector<8x96xf32>
    %21 = vector.broadcast %8 : vector<1x96xf32> to vector<8x96xf32>
    %22 = arith.addf %20, %21 : vector<8x96xf32>
    %23 = vector.broadcast %7 : vector<1x32xf32> to vector<8x32xf32>
    %24 = arith.mulf %19, %23 : vector<8x32xf32>
    %cst_18 = arith.constant dense<0.000000e+00> : vector<8xf32>
    %25 = vector.multi_reduction <add>, %24, %cst_18 [1] : vector<8x32xf32> to vector<8xf32>
    %26 = vector.shape_cast %25 : vector<8xf32> to vector<8x1xf32>
    %27 = vector.broadcast %13 : vector<1x1xf32> to vector<8x1xf32>
    %28 = arith.addf %26, %27 : vector<8x1xf32>
    %c0_19 = arith.constant 0 : index
    %c0_20 = arith.constant 0 : index
    %29 = vector.load %arg0[%c0_19, %c0_20] : memref<64x4xf32, #tpu.memory_space<vmem>>, vector<64x4xf32>
    %cst_21 = arith.constant dense<0.000000e+00> : vector<64x96xf32>
    %30 = tpu.matmul %29, %4, %cst_21 {dimension_numbers = #tpu.dot_dimension_numbers<[1], [0], [0], [1], [0, 0, 1, 1], [], []>} : vector<64x4xf32>, vector<4x96xf32>, vector<64x96xf32> -> vector<64x96xf32>
    %c0_22 = arith.constant 0 : index
    %c0_23 = arith.constant 0 : index
    %c0_24 = arith.constant 0 : index
    %31 = vector.load %arg2[%c0_22, %c0_23, %c0_24] : memref<2x8x32xf32, #tpu.memory_space<vmem>>, vector<1x8x32xf32>
    %32 = vector.shape_cast %31 : vector<1x8x32xf32> to vector<8x32xf32>
    %33 = vector.extract_strided_slice %30 {offsets = [0, 0], sizes = [8, 96], strides = [1, 1]} : vector<64x96xf32> to vector<8x96xf32>
    %34 = arith.addf %33, %22 : vector<8x96xf32>
    %cst_25 = arith.constant dense<0.000000e+00> : vector<8x96xf32>
    %35 = tpu.matmul %32, %0, %cst_25 {dimension_numbers = #tpu.dot_dimension_numbers<[1], [0], [0], [1], [0, 0, 1, 1], [], []>} : vector<8x32xf32>, vector<32x96xf32>, vector<8x96xf32> -> vector<8x96xf32>
    %36 = vector.extract_strided_slice %34 {offsets = [0, 0], sizes = [8, 64], strides = [1, 1]} : vector<8x96xf32> to vector<8x64xf32>
    %37 = vector.extract_strided_slice %35 {offsets = [0, 0], sizes = [8, 64], strides = [1, 1]} : vector<8x96xf32> to vector<8x64xf32>
    %38 = arith.addf %36, %37 : vector<8x64xf32>
    %39 = arith.negf %38 : vector<8x64xf32>
    %40 = math.exp %39 : vector<8x64xf32>
    %cst_26 = arith.constant 1.000000e+00 : f32
    %41 = vector.broadcast %cst_26 : f32 to vector<8x64xf32>
    %42 = arith.addf %41, %40 : vector<8x64xf32>
    %43 = arith.divf %41, %42 : vector<8x64xf32>
    %44 = vector.extract_strided_slice %43 {offsets = [0, 0], sizes = [8, 32], strides = [1, 1]} : vector<8x64xf32> to vector<8x32xf32>
    %45 = vector.extract_strided_slice %43 {offsets = [0, 32], sizes = [8, 32], strides = [1, 1]} : vector<8x64xf32> to vector<8x32xf32>
    %46 = vector.extract_strided_slice %34 {offsets = [0, 64], sizes = [8, 32], strides = [1, 1]} : vector<8x96xf32> to vector<8x32xf32>
    %47 = vector.extract_strided_slice %35 {offsets = [0, 64], sizes = [8, 32], strides = [1, 1]} : vector<8x96xf32> to vector<8x32xf32>
    %48 = vector.broadcast %10 : vector<1x32xf32> to vector<8x32xf32>
    %49 = arith.addf %47, %48 : vector<8x32xf32>
    %50 = arith.mulf %44, %49 : vector<8x32xf32>
    %51 = arith.addf %46, %50 : vector<8x32xf32>
    %52 = math.tanh %51 : vector<8x32xf32>
    %53 = arith.subf %32, %52 : vector<8x32xf32>
    %54 = arith.mulf %45, %53 : vector<8x32xf32>
    %55 = arith.addf %52, %54 : vector<8x32xf32>
    %56 = vector.extract_strided_slice %30 {offsets = [8, 0], sizes = [8, 96], strides = [1, 1]} : vector<64x96xf32> to vector<8x96xf32>
    %57 = arith.addf %56, %22 : vector<8x96xf32>
    %cst_27 = arith.constant dense<0.000000e+00> : vector<8x96xf32>
    %58 = tpu.matmul %55, %0, %cst_27 {dimension_numbers = #tpu.dot_dimension_numbers<[1], [0], [0], [1], [0, 0, 1, 1], [], []>} : vector<8x32xf32>, vector<32x96xf32>, vector<8x96xf32> -> vector<8x96xf32>
    %59 = vector.extract_strided_slice %57 {offsets = [0, 0], sizes = [8, 64], strides = [1, 1]} : vector<8x96xf32> to vector<8x64xf32>
    %60 = vector.extract_strided_slice %58 {offsets = [0, 0], sizes = [8, 64], strides = [1, 1]} : vector<8x96xf32> to vector<8x64xf32>
    %61 = arith.addf %59, %60 : vector<8x64xf32>
    %62 = arith.negf %61 : vector<8x64xf32>
    %63 = math.exp %62 : vector<8x64xf32>
    %cst_28 = arith.constant 1.000000e+00 : f32
    %64 = vector.broadcast %cst_28 : f32 to vector<8x64xf32>
    %65 = arith.addf %64, %63 : vector<8x64xf32>
    %66 = arith.divf %64, %65 : vector<8x64xf32>
    %67 = vector.extract_strided_slice %66 {offsets = [0, 0], sizes = [8, 32], strides = [1, 1]} : vector<8x64xf32> to vector<8x32xf32>
    %68 = vector.extract_strided_slice %66 {offsets = [0, 32], sizes = [8, 32], strides = [1, 1]} : vector<8x64xf32> to vector<8x32xf32>
    %69 = vector.extract_strided_slice %57 {offsets = [0, 64], sizes = [8, 32], strides = [1, 1]} : vector<8x96xf32> to vector<8x32xf32>
    %70 = vector.extract_strided_slice %58 {offsets = [0, 64], sizes = [8, 32], strides = [1, 1]} : vector<8x96xf32> to vector<8x32xf32>
    %71 = vector.broadcast %10 : vector<1x32xf32> to vector<8x32xf32>
    %72 = arith.addf %70, %71 : vector<8x32xf32>
    %73 = arith.mulf %67, %72 : vector<8x32xf32>
    %74 = arith.addf %69, %73 : vector<8x32xf32>
    %75 = math.tanh %74 : vector<8x32xf32>
    %76 = arith.subf %55, %75 : vector<8x32xf32>
    %77 = arith.mulf %68, %76 : vector<8x32xf32>
    %78 = arith.addf %75, %77 : vector<8x32xf32>
    %79 = vector.extract_strided_slice %30 {offsets = [16, 0], sizes = [8, 96], strides = [1, 1]} : vector<64x96xf32> to vector<8x96xf32>
    %80 = arith.addf %79, %22 : vector<8x96xf32>
    %cst_29 = arith.constant dense<0.000000e+00> : vector<8x96xf32>
    %81 = tpu.matmul %78, %0, %cst_29 {dimension_numbers = #tpu.dot_dimension_numbers<[1], [0], [0], [1], [0, 0, 1, 1], [], []>} : vector<8x32xf32>, vector<32x96xf32>, vector<8x96xf32> -> vector<8x96xf32>
    %82 = vector.extract_strided_slice %80 {offsets = [0, 0], sizes = [8, 64], strides = [1, 1]} : vector<8x96xf32> to vector<8x64xf32>
    %83 = vector.extract_strided_slice %81 {offsets = [0, 0], sizes = [8, 64], strides = [1, 1]} : vector<8x96xf32> to vector<8x64xf32>
    %84 = arith.addf %82, %83 : vector<8x64xf32>
    %85 = arith.negf %84 : vector<8x64xf32>
    %86 = math.exp %85 : vector<8x64xf32>
    %cst_30 = arith.constant 1.000000e+00 : f32
    %87 = vector.broadcast %cst_30 : f32 to vector<8x64xf32>
    %88 = arith.addf %87, %86 : vector<8x64xf32>
    %89 = arith.divf %87, %88 : vector<8x64xf32>
    %90 = vector.extract_strided_slice %89 {offsets = [0, 0], sizes = [8, 32], strides = [1, 1]} : vector<8x64xf32> to vector<8x32xf32>
    %91 = vector.extract_strided_slice %89 {offsets = [0, 32], sizes = [8, 32], strides = [1, 1]} : vector<8x64xf32> to vector<8x32xf32>
    %92 = vector.extract_strided_slice %80 {offsets = [0, 64], sizes = [8, 32], strides = [1, 1]} : vector<8x96xf32> to vector<8x32xf32>
    %93 = vector.extract_strided_slice %81 {offsets = [0, 64], sizes = [8, 32], strides = [1, 1]} : vector<8x96xf32> to vector<8x32xf32>
    %94 = vector.broadcast %10 : vector<1x32xf32> to vector<8x32xf32>
    %95 = arith.addf %93, %94 : vector<8x32xf32>
    %96 = arith.mulf %90, %95 : vector<8x32xf32>
    %97 = arith.addf %92, %96 : vector<8x32xf32>
    %98 = math.tanh %97 : vector<8x32xf32>
    %99 = arith.subf %78, %98 : vector<8x32xf32>
    %100 = arith.mulf %91, %99 : vector<8x32xf32>
    %101 = arith.addf %98, %100 : vector<8x32xf32>
    %102 = vector.extract_strided_slice %30 {offsets = [24, 0], sizes = [8, 96], strides = [1, 1]} : vector<64x96xf32> to vector<8x96xf32>
    %103 = arith.addf %102, %22 : vector<8x96xf32>
    %cst_31 = arith.constant dense<0.000000e+00> : vector<8x96xf32>
    %104 = tpu.matmul %101, %0, %cst_31 {dimension_numbers = #tpu.dot_dimension_numbers<[1], [0], [0], [1], [0, 0, 1, 1], [], []>} : vector<8x32xf32>, vector<32x96xf32>, vector<8x96xf32> -> vector<8x96xf32>
    %105 = vector.extract_strided_slice %103 {offsets = [0, 0], sizes = [8, 64], strides = [1, 1]} : vector<8x96xf32> to vector<8x64xf32>
    %106 = vector.extract_strided_slice %104 {offsets = [0, 0], sizes = [8, 64], strides = [1, 1]} : vector<8x96xf32> to vector<8x64xf32>
    %107 = arith.addf %105, %106 : vector<8x64xf32>
    %108 = arith.negf %107 : vector<8x64xf32>
    %109 = math.exp %108 : vector<8x64xf32>
    %cst_32 = arith.constant 1.000000e+00 : f32
    %110 = vector.broadcast %cst_32 : f32 to vector<8x64xf32>
    %111 = arith.addf %110, %109 : vector<8x64xf32>
    %112 = arith.divf %110, %111 : vector<8x64xf32>
    %113 = vector.extract_strided_slice %112 {offsets = [0, 0], sizes = [8, 32], strides = [1, 1]} : vector<8x64xf32> to vector<8x32xf32>
    %114 = vector.extract_strided_slice %112 {offsets = [0, 32], sizes = [8, 32], strides = [1, 1]} : vector<8x64xf32> to vector<8x32xf32>
    %115 = vector.extract_strided_slice %103 {offsets = [0, 64], sizes = [8, 32], strides = [1, 1]} : vector<8x96xf32> to vector<8x32xf32>
    %116 = vector.extract_strided_slice %104 {offsets = [0, 64], sizes = [8, 32], strides = [1, 1]} : vector<8x96xf32> to vector<8x32xf32>
    %117 = vector.broadcast %10 : vector<1x32xf32> to vector<8x32xf32>
    %118 = arith.addf %116, %117 : vector<8x32xf32>
    %119 = arith.mulf %113, %118 : vector<8x32xf32>
    %120 = arith.addf %115, %119 : vector<8x32xf32>
    %121 = math.tanh %120 : vector<8x32xf32>
    %122 = arith.subf %101, %121 : vector<8x32xf32>
    %123 = arith.mulf %114, %122 : vector<8x32xf32>
    %124 = arith.addf %121, %123 : vector<8x32xf32>
    %125 = vector.extract_strided_slice %30 {offsets = [32, 0], sizes = [8, 96], strides = [1, 1]} : vector<64x96xf32> to vector<8x96xf32>
    %126 = arith.addf %125, %22 : vector<8x96xf32>
    %cst_33 = arith.constant dense<0.000000e+00> : vector<8x96xf32>
    %127 = tpu.matmul %124, %0, %cst_33 {dimension_numbers = #tpu.dot_dimension_numbers<[1], [0], [0], [1], [0, 0, 1, 1], [], []>} : vector<8x32xf32>, vector<32x96xf32>, vector<8x96xf32> -> vector<8x96xf32>
    %128 = vector.extract_strided_slice %126 {offsets = [0, 0], sizes = [8, 64], strides = [1, 1]} : vector<8x96xf32> to vector<8x64xf32>
    %129 = vector.extract_strided_slice %127 {offsets = [0, 0], sizes = [8, 64], strides = [1, 1]} : vector<8x96xf32> to vector<8x64xf32>
    %130 = arith.addf %128, %129 : vector<8x64xf32>
    %131 = arith.negf %130 : vector<8x64xf32>
    %132 = math.exp %131 : vector<8x64xf32>
    %cst_34 = arith.constant 1.000000e+00 : f32
    %133 = vector.broadcast %cst_34 : f32 to vector<8x64xf32>
    %134 = arith.addf %133, %132 : vector<8x64xf32>
    %135 = arith.divf %133, %134 : vector<8x64xf32>
    %136 = vector.extract_strided_slice %135 {offsets = [0, 0], sizes = [8, 32], strides = [1, 1]} : vector<8x64xf32> to vector<8x32xf32>
    %137 = vector.extract_strided_slice %135 {offsets = [0, 32], sizes = [8, 32], strides = [1, 1]} : vector<8x64xf32> to vector<8x32xf32>
    %138 = vector.extract_strided_slice %126 {offsets = [0, 64], sizes = [8, 32], strides = [1, 1]} : vector<8x96xf32> to vector<8x32xf32>
    %139 = vector.extract_strided_slice %127 {offsets = [0, 64], sizes = [8, 32], strides = [1, 1]} : vector<8x96xf32> to vector<8x32xf32>
    %140 = vector.broadcast %10 : vector<1x32xf32> to vector<8x32xf32>
    %141 = arith.addf %139, %140 : vector<8x32xf32>
    %142 = arith.mulf %136, %141 : vector<8x32xf32>
    %143 = arith.addf %138, %142 : vector<8x32xf32>
    %144 = math.tanh %143 : vector<8x32xf32>
    %145 = arith.subf %124, %144 : vector<8x32xf32>
    %146 = arith.mulf %137, %145 : vector<8x32xf32>
    %147 = arith.addf %144, %146 : vector<8x32xf32>
    %148 = vector.extract_strided_slice %30 {offsets = [40, 0], sizes = [8, 96], strides = [1, 1]} : vector<64x96xf32> to vector<8x96xf32>
    %149 = arith.addf %148, %22 : vector<8x96xf32>
    %cst_35 = arith.constant dense<0.000000e+00> : vector<8x96xf32>
    %150 = tpu.matmul %147, %0, %cst_35 {dimension_numbers = #tpu.dot_dimension_numbers<[1], [0], [0], [1], [0, 0, 1, 1], [], []>} : vector<8x32xf32>, vector<32x96xf32>, vector<8x96xf32> -> vector<8x96xf32>
    %151 = vector.extract_strided_slice %149 {offsets = [0, 0], sizes = [8, 64], strides = [1, 1]} : vector<8x96xf32> to vector<8x64xf32>
    %152 = vector.extract_strided_slice %150 {offsets = [0, 0], sizes = [8, 64], strides = [1, 1]} : vector<8x96xf32> to vector<8x64xf32>
    %153 = arith.addf %151, %152 : vector<8x64xf32>
    %154 = arith.negf %153 : vector<8x64xf32>
    %155 = math.exp %154 : vector<8x64xf32>
    %cst_36 = arith.constant 1.000000e+00 : f32
    %156 = vector.broadcast %cst_36 : f32 to vector<8x64xf32>
    %157 = arith.addf %156, %155 : vector<8x64xf32>
    %158 = arith.divf %156, %157 : vector<8x64xf32>
    %159 = vector.extract_strided_slice %158 {offsets = [0, 0], sizes = [8, 32], strides = [1, 1]} : vector<8x64xf32> to vector<8x32xf32>
    %160 = vector.extract_strided_slice %158 {offsets = [0, 32], sizes = [8, 32], strides = [1, 1]} : vector<8x64xf32> to vector<8x32xf32>
    %161 = vector.extract_strided_slice %149 {offsets = [0, 64], sizes = [8, 32], strides = [1, 1]} : vector<8x96xf32> to vector<8x32xf32>
    %162 = vector.extract_strided_slice %150 {offsets = [0, 64], sizes = [8, 32], strides = [1, 1]} : vector<8x96xf32> to vector<8x32xf32>
    %163 = vector.broadcast %10 : vector<1x32xf32> to vector<8x32xf32>
    %164 = arith.addf %162, %163 : vector<8x32xf32>
    %165 = arith.mulf %159, %164 : vector<8x32xf32>
    %166 = arith.addf %161, %165 : vector<8x32xf32>
    %167 = math.tanh %166 : vector<8x32xf32>
    %168 = arith.subf %147, %167 : vector<8x32xf32>
    %169 = arith.mulf %160, %168 : vector<8x32xf32>
    %170 = arith.addf %167, %169 : vector<8x32xf32>
    %171 = vector.extract_strided_slice %30 {offsets = [48, 0], sizes = [8, 96], strides = [1, 1]} : vector<64x96xf32> to vector<8x96xf32>
    %172 = arith.addf %171, %22 : vector<8x96xf32>
    %cst_37 = arith.constant dense<0.000000e+00> : vector<8x96xf32>
    %173 = tpu.matmul %170, %0, %cst_37 {dimension_numbers = #tpu.dot_dimension_numbers<[1], [0], [0], [1], [0, 0, 1, 1], [], []>} : vector<8x32xf32>, vector<32x96xf32>, vector<8x96xf32> -> vector<8x96xf32>
    %174 = vector.extract_strided_slice %172 {offsets = [0, 0], sizes = [8, 64], strides = [1, 1]} : vector<8x96xf32> to vector<8x64xf32>
    %175 = vector.extract_strided_slice %173 {offsets = [0, 0], sizes = [8, 64], strides = [1, 1]} : vector<8x96xf32> to vector<8x64xf32>
    %176 = arith.addf %174, %175 : vector<8x64xf32>
    %177 = arith.negf %176 : vector<8x64xf32>
    %178 = math.exp %177 : vector<8x64xf32>
    %cst_38 = arith.constant 1.000000e+00 : f32
    %179 = vector.broadcast %cst_38 : f32 to vector<8x64xf32>
    %180 = arith.addf %179, %178 : vector<8x64xf32>
    %181 = arith.divf %179, %180 : vector<8x64xf32>
    %182 = vector.extract_strided_slice %181 {offsets = [0, 0], sizes = [8, 32], strides = [1, 1]} : vector<8x64xf32> to vector<8x32xf32>
    %183 = vector.extract_strided_slice %181 {offsets = [0, 32], sizes = [8, 32], strides = [1, 1]} : vector<8x64xf32> to vector<8x32xf32>
    %184 = vector.extract_strided_slice %172 {offsets = [0, 64], sizes = [8, 32], strides = [1, 1]} : vector<8x96xf32> to vector<8x32xf32>
    %185 = vector.extract_strided_slice %173 {offsets = [0, 64], sizes = [8, 32], strides = [1, 1]} : vector<8x96xf32> to vector<8x32xf32>
    %186 = vector.broadcast %10 : vector<1x32xf32> to vector<8x32xf32>
    %187 = arith.addf %185, %186 : vector<8x32xf32>
    %188 = arith.mulf %182, %187 : vector<8x32xf32>
    %189 = arith.addf %184, %188 : vector<8x32xf32>
    %190 = math.tanh %189 : vector<8x32xf32>
    %191 = arith.subf %170, %190 : vector<8x32xf32>
    %192 = arith.mulf %183, %191 : vector<8x32xf32>
    %193 = arith.addf %190, %192 : vector<8x32xf32>
    %194 = vector.extract_strided_slice %30 {offsets = [56, 0], sizes = [8, 96], strides = [1, 1]} : vector<64x96xf32> to vector<8x96xf32>
    %195 = arith.addf %194, %22 : vector<8x96xf32>
    %cst_39 = arith.constant dense<0.000000e+00> : vector<8x96xf32>
    %196 = tpu.matmul %193, %0, %cst_39 {dimension_numbers = #tpu.dot_dimension_numbers<[1], [0], [0], [1], [0, 0, 1, 1], [], []>} : vector<8x32xf32>, vector<32x96xf32>, vector<8x96xf32> -> vector<8x96xf32>
    %197 = vector.extract_strided_slice %195 {offsets = [0, 0], sizes = [8, 64], strides = [1, 1]} : vector<8x96xf32> to vector<8x64xf32>
    %198 = vector.extract_strided_slice %196 {offsets = [0, 0], sizes = [8, 64], strides = [1, 1]} : vector<8x96xf32> to vector<8x64xf32>
    %199 = arith.addf %197, %198 : vector<8x64xf32>
    %200 = arith.negf %199 : vector<8x64xf32>
    %201 = math.exp %200 : vector<8x64xf32>
    %cst_40 = arith.constant 1.000000e+00 : f32
    %202 = vector.broadcast %cst_40 : f32 to vector<8x64xf32>
    %203 = arith.addf %202, %201 : vector<8x64xf32>
    %204 = arith.divf %202, %203 : vector<8x64xf32>
    %205 = vector.extract_strided_slice %204 {offsets = [0, 0], sizes = [8, 32], strides = [1, 1]} : vector<8x64xf32> to vector<8x32xf32>
    %206 = vector.extract_strided_slice %204 {offsets = [0, 32], sizes = [8, 32], strides = [1, 1]} : vector<8x64xf32> to vector<8x32xf32>
    %207 = vector.extract_strided_slice %195 {offsets = [0, 64], sizes = [8, 32], strides = [1, 1]} : vector<8x96xf32> to vector<8x32xf32>
    %208 = vector.extract_strided_slice %196 {offsets = [0, 64], sizes = [8, 32], strides = [1, 1]} : vector<8x96xf32> to vector<8x32xf32>
    %209 = vector.broadcast %10 : vector<1x32xf32> to vector<8x32xf32>
    %210 = arith.addf %208, %209 : vector<8x32xf32>
    %211 = arith.mulf %205, %210 : vector<8x32xf32>
    %212 = arith.addf %207, %211 : vector<8x32xf32>
    %213 = math.tanh %212 : vector<8x32xf32>
    %214 = arith.subf %193, %213 : vector<8x32xf32>
    %215 = arith.mulf %206, %214 : vector<8x32xf32>
    %216 = arith.addf %213, %215 : vector<8x32xf32>
    %c0_41 = arith.constant 0 : index
    %c0_42 = arith.constant 0 : index
    %c0_43 = arith.constant 0 : index
    %217 = vector.load %arg5[%c0_41, %c0_42, %c0_43] : memref<2x8x32xf32, #tpu.memory_space<vmem>>, vector<1x8x32xf32>
    %218 = vector.shape_cast %217 : vector<1x8x32xf32> to vector<8x32xf32>
    %219 = vector.shape_cast %216 : vector<8x32xf32> to vector<1x8x32xf32>
    tpu.vector_store %arg5[%c0_41, %c0_42, %c0_43], %219 {strides = array<i32>} : memref<2x8x32xf32, #tpu.memory_space<vmem>>, vector<1x8x32xf32>,
    %220 = tpu.concatenate %55, %78, %101, %124, %147, %170, %193, %216 in 0 : vector<8x32xf32>, vector<8x32xf32>, vector<8x32xf32>, vector<8x32xf32>, vector<8x32xf32>, vector<8x32xf32>, vector<8x32xf32>, vector<8x32xf32> -> vector<64x32xf32>
    %cst_44 = arith.constant dense<0.000000e+00> : vector<64x96xf32>
    %221 = tpu.matmul %220, %3, %cst_44 {dimension_numbers = #tpu.dot_dimension_numbers<[1], [0], [0], [1], [0, 0, 1, 1], [], []>} : vector<64x32xf32>, vector<32x96xf32>, vector<64x96xf32> -> vector<64x96xf32>
    %222 = vector.broadcast %9 : vector<1x96xf32> to vector<64x96xf32>
    %223 = arith.addf %221, %222 : vector<64x96xf32>
    %c1 = arith.constant 1 : index
    %c0_45 = arith.constant 0 : index
    %c0_46 = arith.constant 0 : index
    %224 = vector.load %arg2[%c1, %c0_45, %c0_46] : memref<2x8x32xf32, #tpu.memory_space<vmem>>, vector<1x8x32xf32>
    %225 = vector.shape_cast %224 : vector<1x8x32xf32> to vector<8x32xf32>
    %226 = vector.extract_strided_slice %223 {offsets = [0, 0], sizes = [8, 96], strides = [1, 1]} : vector<64x96xf32> to vector<8x96xf32>
    %cst_47 = arith.constant dense<0.000000e+00> : vector<8x96xf32>
    %227 = tpu.matmul %225, %1, %cst_47 {dimension_numbers = #tpu.dot_dimension_numbers<[1], [0], [0], [1], [0, 0, 1, 1], [], []>} : vector<8x32xf32>, vector<32x96xf32>, vector<8x96xf32> -> vector<8x96xf32>
    %228 = vector.extract_strided_slice %226 {offsets = [0, 0], sizes = [8, 64], strides = [1, 1]} : vector<8x96xf32> to vector<8x64xf32>
    %229 = vector.extract_strided_slice %227 {offsets = [0, 0], sizes = [8, 64], strides = [1, 1]} : vector<8x96xf32> to vector<8x64xf32>
    %230 = arith.addf %228, %229 : vector<8x64xf32>
    %231 = arith.negf %230 : vector<8x64xf32>
    %232 = math.exp %231 : vector<8x64xf32>
    %cst_48 = arith.constant 1.000000e+00 : f32
    %233 = vector.broadcast %cst_48 : f32 to vector<8x64xf32>
    %234 = arith.addf %233, %232 : vector<8x64xf32>
    %235 = arith.divf %233, %234 : vector<8x64xf32>
    %236 = vector.extract_strided_slice %235 {offsets = [0, 0], sizes = [8, 32], strides = [1, 1]} : vector<8x64xf32> to vector<8x32xf32>
    %237 = vector.extract_strided_slice %235 {offsets = [0, 32], sizes = [8, 32], strides = [1, 1]} : vector<8x64xf32> to vector<8x32xf32>
    %238 = vector.extract_strided_slice %226 {offsets = [0, 64], sizes = [8, 32], strides = [1, 1]} : vector<8x96xf32> to vector<8x32xf32>
    %239 = vector.extract_strided_slice %227 {offsets = [0, 64], sizes = [8, 32], strides = [1, 1]} : vector<8x96xf32> to vector<8x32xf32>
    %240 = vector.broadcast %11 : vector<1x32xf32> to vector<8x32xf32>
    %241 = arith.addf %239, %240 : vector<8x32xf32>
    %242 = arith.mulf %236, %241 : vector<8x32xf32>
    %243 = arith.addf %238, %242 : vector<8x32xf32>
    %244 = math.tanh %243 : vector<8x32xf32>
    %245 = arith.subf %225, %244 : vector<8x32xf32>
    %246 = arith.mulf %237, %245 : vector<8x32xf32>
    %247 = arith.addf %244, %246 : vector<8x32xf32>
    %248 = vector.extract_strided_slice %223 {offsets = [8, 0], sizes = [8, 96], strides = [1, 1]} : vector<64x96xf32> to vector<8x96xf32>
    %cst_49 = arith.constant dense<0.000000e+00> : vector<8x96xf32>
    %249 = tpu.matmul %247, %1, %cst_49 {dimension_numbers = #tpu.dot_dimension_numbers<[1], [0], [0], [1], [0, 0, 1, 1], [], []>} : vector<8x32xf32>, vector<32x96xf32>, vector<8x96xf32> -> vector<8x96xf32>
    %250 = vector.extract_strided_slice %248 {offsets = [0, 0], sizes = [8, 64], strides = [1, 1]} : vector<8x96xf32> to vector<8x64xf32>
    %251 = vector.extract_strided_slice %249 {offsets = [0, 0], sizes = [8, 64], strides = [1, 1]} : vector<8x96xf32> to vector<8x64xf32>
    %252 = arith.addf %250, %251 : vector<8x64xf32>
    %253 = arith.negf %252 : vector<8x64xf32>
    %254 = math.exp %253 : vector<8x64xf32>
    %cst_50 = arith.constant 1.000000e+00 : f32
    %255 = vector.broadcast %cst_50 : f32 to vector<8x64xf32>
    %256 = arith.addf %255, %254 : vector<8x64xf32>
    %257 = arith.divf %255, %256 : vector<8x64xf32>
    %258 = vector.extract_strided_slice %257 {offsets = [0, 0], sizes = [8, 32], strides = [1, 1]} : vector<8x64xf32> to vector<8x32xf32>
    %259 = vector.extract_strided_slice %257 {offsets = [0, 32], sizes = [8, 32], strides = [1, 1]} : vector<8x64xf32> to vector<8x32xf32>
    %260 = vector.extract_strided_slice %248 {offsets = [0, 64], sizes = [8, 32], strides = [1, 1]} : vector<8x96xf32> to vector<8x32xf32>
    %261 = vector.extract_strided_slice %249 {offsets = [0, 64], sizes = [8, 32], strides = [1, 1]} : vector<8x96xf32> to vector<8x32xf32>
    %262 = vector.broadcast %11 : vector<1x32xf32> to vector<8x32xf32>
    %263 = arith.addf %261, %262 : vector<8x32xf32>
    %264 = arith.mulf %258, %263 : vector<8x32xf32>
    %265 = arith.addf %260, %264 : vector<8x32xf32>
    %266 = math.tanh %265 : vector<8x32xf32>
    %267 = arith.subf %247, %266 : vector<8x32xf32>
    %268 = arith.mulf %259, %267 : vector<8x32xf32>
    %269 = arith.addf %266, %268 : vector<8x32xf32>
    %270 = vector.extract_strided_slice %223 {offsets = [16, 0], sizes = [8, 96], strides = [1, 1]} : vector<64x96xf32> to vector<8x96xf32>
    %cst_51 = arith.constant dense<0.000000e+00> : vector<8x96xf32>
    %271 = tpu.matmul %269, %1, %cst_51 {dimension_numbers = #tpu.dot_dimension_numbers<[1], [0], [0], [1], [0, 0, 1, 1], [], []>} : vector<8x32xf32>, vector<32x96xf32>, vector<8x96xf32> -> vector<8x96xf32>
    %272 = vector.extract_strided_slice %270 {offsets = [0, 0], sizes = [8, 64], strides = [1, 1]} : vector<8x96xf32> to vector<8x64xf32>
    %273 = vector.extract_strided_slice %271 {offsets = [0, 0], sizes = [8, 64], strides = [1, 1]} : vector<8x96xf32> to vector<8x64xf32>
    %274 = arith.addf %272, %273 : vector<8x64xf32>
    %275 = arith.negf %274 : vector<8x64xf32>
    %276 = math.exp %275 : vector<8x64xf32>
    %cst_52 = arith.constant 1.000000e+00 : f32
    %277 = vector.broadcast %cst_52 : f32 to vector<8x64xf32>
    %278 = arith.addf %277, %276 : vector<8x64xf32>
    %279 = arith.divf %277, %278 : vector<8x64xf32>
    %280 = vector.extract_strided_slice %279 {offsets = [0, 0], sizes = [8, 32], strides = [1, 1]} : vector<8x64xf32> to vector<8x32xf32>
    %281 = vector.extract_strided_slice %279 {offsets = [0, 32], sizes = [8, 32], strides = [1, 1]} : vector<8x64xf32> to vector<8x32xf32>
    %282 = vector.extract_strided_slice %270 {offsets = [0, 64], sizes = [8, 32], strides = [1, 1]} : vector<8x96xf32> to vector<8x32xf32>
    %283 = vector.extract_strided_slice %271 {offsets = [0, 64], sizes = [8, 32], strides = [1, 1]} : vector<8x96xf32> to vector<8x32xf32>
    %284 = vector.broadcast %11 : vector<1x32xf32> to vector<8x32xf32>
    %285 = arith.addf %283, %284 : vector<8x32xf32>
    %286 = arith.mulf %280, %285 : vector<8x32xf32>
    %287 = arith.addf %282, %286 : vector<8x32xf32>
    %288 = math.tanh %287 : vector<8x32xf32>
    %289 = arith.subf %269, %288 : vector<8x32xf32>
    %290 = arith.mulf %281, %289 : vector<8x32xf32>
    %291 = arith.addf %288, %290 : vector<8x32xf32>
    %292 = vector.extract_strided_slice %223 {offsets = [24, 0], sizes = [8, 96], strides = [1, 1]} : vector<64x96xf32> to vector<8x96xf32>
    %cst_53 = arith.constant dense<0.000000e+00> : vector<8x96xf32>
    %293 = tpu.matmul %291, %1, %cst_53 {dimension_numbers = #tpu.dot_dimension_numbers<[1], [0], [0], [1], [0, 0, 1, 1], [], []>} : vector<8x32xf32>, vector<32x96xf32>, vector<8x96xf32> -> vector<8x96xf32>
    %294 = vector.extract_strided_slice %292 {offsets = [0, 0], sizes = [8, 64], strides = [1, 1]} : vector<8x96xf32> to vector<8x64xf32>
    %295 = vector.extract_strided_slice %293 {offsets = [0, 0], sizes = [8, 64], strides = [1, 1]} : vector<8x96xf32> to vector<8x64xf32>
    %296 = arith.addf %294, %295 : vector<8x64xf32>
    %297 = arith.negf %296 : vector<8x64xf32>
    %298 = math.exp %297 : vector<8x64xf32>
    %cst_54 = arith.constant 1.000000e+00 : f32
    %299 = vector.broadcast %cst_54 : f32 to vector<8x64xf32>
    %300 = arith.addf %299, %298 : vector<8x64xf32>
    %301 = arith.divf %299, %300 : vector<8x64xf32>
    %302 = vector.extract_strided_slice %301 {offsets = [0, 0], sizes = [8, 32], strides = [1, 1]} : vector<8x64xf32> to vector<8x32xf32>
    %303 = vector.extract_strided_slice %301 {offsets = [0, 32], sizes = [8, 32], strides = [1, 1]} : vector<8x64xf32> to vector<8x32xf32>
    %304 = vector.extract_strided_slice %292 {offsets = [0, 64], sizes = [8, 32], strides = [1, 1]} : vector<8x96xf32> to vector<8x32xf32>
    %305 = vector.extract_strided_slice %293 {offsets = [0, 64], sizes = [8, 32], strides = [1, 1]} : vector<8x96xf32> to vector<8x32xf32>
    %306 = vector.broadcast %11 : vector<1x32xf32> to vector<8x32xf32>
    %307 = arith.addf %305, %306 : vector<8x32xf32>
    %308 = arith.mulf %302, %307 : vector<8x32xf32>
    %309 = arith.addf %304, %308 : vector<8x32xf32>
    %310 = math.tanh %309 : vector<8x32xf32>
    %311 = arith.subf %291, %310 : vector<8x32xf32>
    %312 = arith.mulf %303, %311 : vector<8x32xf32>
    %313 = arith.addf %310, %312 : vector<8x32xf32>
    %314 = vector.extract_strided_slice %223 {offsets = [32, 0], sizes = [8, 96], strides = [1, 1]} : vector<64x96xf32> to vector<8x96xf32>
    %cst_55 = arith.constant dense<0.000000e+00> : vector<8x96xf32>
    %315 = tpu.matmul %313, %1, %cst_55 {dimension_numbers = #tpu.dot_dimension_numbers<[1], [0], [0], [1], [0, 0, 1, 1], [], []>} : vector<8x32xf32>, vector<32x96xf32>, vector<8x96xf32> -> vector<8x96xf32>
    %316 = vector.extract_strided_slice %314 {offsets = [0, 0], sizes = [8, 64], strides = [1, 1]} : vector<8x96xf32> to vector<8x64xf32>
    %317 = vector.extract_strided_slice %315 {offsets = [0, 0], sizes = [8, 64], strides = [1, 1]} : vector<8x96xf32> to vector<8x64xf32>
    %318 = arith.addf %316, %317 : vector<8x64xf32>
    %319 = arith.negf %318 : vector<8x64xf32>
    %320 = math.exp %319 : vector<8x64xf32>
    %cst_56 = arith.constant 1.000000e+00 : f32
    %321 = vector.broadcast %cst_56 : f32 to vector<8x64xf32>
    %322 = arith.addf %321, %320 : vector<8x64xf32>
    %323 = arith.divf %321, %322 : vector<8x64xf32>
    %324 = vector.extract_strided_slice %323 {offsets = [0, 0], sizes = [8, 32], strides = [1, 1]} : vector<8x64xf32> to vector<8x32xf32>
    %325 = vector.extract_strided_slice %323 {offsets = [0, 32], sizes = [8, 32], strides = [1, 1]} : vector<8x64xf32> to vector<8x32xf32>
    %326 = vector.extract_strided_slice %314 {offsets = [0, 64], sizes = [8, 32], strides = [1, 1]} : vector<8x96xf32> to vector<8x32xf32>
    %327 = vector.extract_strided_slice %315 {offsets = [0, 64], sizes = [8, 32], strides = [1, 1]} : vector<8x96xf32> to vector<8x32xf32>
    %328 = vector.broadcast %11 : vector<1x32xf32> to vector<8x32xf32>
    %329 = arith.addf %327, %328 : vector<8x32xf32>
    %330 = arith.mulf %324, %329 : vector<8x32xf32>
    %331 = arith.addf %326, %330 : vector<8x32xf32>
    %332 = math.tanh %331 : vector<8x32xf32>
    %333 = arith.subf %313, %332 : vector<8x32xf32>
    %334 = arith.mulf %325, %333 : vector<8x32xf32>
    %335 = arith.addf %332, %334 : vector<8x32xf32>
    %336 = vector.extract_strided_slice %223 {offsets = [40, 0], sizes = [8, 96], strides = [1, 1]} : vector<64x96xf32> to vector<8x96xf32>
    %cst_57 = arith.constant dense<0.000000e+00> : vector<8x96xf32>
    %337 = tpu.matmul %335, %1, %cst_57 {dimension_numbers = #tpu.dot_dimension_numbers<[1], [0], [0], [1], [0, 0, 1, 1], [], []>} : vector<8x32xf32>, vector<32x96xf32>, vector<8x96xf32> -> vector<8x96xf32>
    %338 = vector.extract_strided_slice %336 {offsets = [0, 0], sizes = [8, 64], strides = [1, 1]} : vector<8x96xf32> to vector<8x64xf32>
    %339 = vector.extract_strided_slice %337 {offsets = [0, 0], sizes = [8, 64], strides = [1, 1]} : vector<8x96xf32> to vector<8x64xf32>
    %340 = arith.addf %338, %339 : vector<8x64xf32>
    %341 = arith.negf %340 : vector<8x64xf32>
    %342 = math.exp %341 : vector<8x64xf32>
    %cst_58 = arith.constant 1.000000e+00 : f32
    %343 = vector.broadcast %cst_58 : f32 to vector<8x64xf32>
    %344 = arith.addf %343, %342 : vector<8x64xf32>
    %345 = arith.divf %343, %344 : vector<8x64xf32>
    %346 = vector.extract_strided_slice %345 {offsets = [0, 0], sizes = [8, 32], strides = [1, 1]} : vector<8x64xf32> to vector<8x32xf32>
    %347 = vector.extract_strided_slice %345 {offsets = [0, 32], sizes = [8, 32], strides = [1, 1]} : vector<8x64xf32> to vector<8x32xf32>
    %348 = vector.extract_strided_slice %336 {offsets = [0, 64], sizes = [8, 32], strides = [1, 1]} : vector<8x96xf32> to vector<8x32xf32>
    %349 = vector.extract_strided_slice %337 {offsets = [0, 64], sizes = [8, 32], strides = [1, 1]} : vector<8x96xf32> to vector<8x32xf32>
    %350 = vector.broadcast %11 : vector<1x32xf32> to vector<8x32xf32>
    %351 = arith.addf %349, %350 : vector<8x32xf32>
    %352 = arith.mulf %346, %351 : vector<8x32xf32>
    %353 = arith.addf %348, %352 : vector<8x32xf32>
    %354 = math.tanh %353 : vector<8x32xf32>
    %355 = arith.subf %335, %354 : vector<8x32xf32>
    %356 = arith.mulf %347, %355 : vector<8x32xf32>
    %357 = arith.addf %354, %356 : vector<8x32xf32>
    %358 = vector.extract_strided_slice %223 {offsets = [48, 0], sizes = [8, 96], strides = [1, 1]} : vector<64x96xf32> to vector<8x96xf32>
    %cst_59 = arith.constant dense<0.000000e+00> : vector<8x96xf32>
    %359 = tpu.matmul %357, %1, %cst_59 {dimension_numbers = #tpu.dot_dimension_numbers<[1], [0], [0], [1], [0, 0, 1, 1], [], []>} : vector<8x32xf32>, vector<32x96xf32>, vector<8x96xf32> -> vector<8x96xf32>
    %360 = vector.extract_strided_slice %358 {offsets = [0, 0], sizes = [8, 64], strides = [1, 1]} : vector<8x96xf32> to vector<8x64xf32>
    %361 = vector.extract_strided_slice %359 {offsets = [0, 0], sizes = [8, 64], strides = [1, 1]} : vector<8x96xf32> to vector<8x64xf32>
    %362 = arith.addf %360, %361 : vector<8x64xf32>
    %363 = arith.negf %362 : vector<8x64xf32>
    %364 = math.exp %363 : vector<8x64xf32>
    %cst_60 = arith.constant 1.000000e+00 : f32
    %365 = vector.broadcast %cst_60 : f32 to vector<8x64xf32>
    %366 = arith.addf %365, %364 : vector<8x64xf32>
    %367 = arith.divf %365, %366 : vector<8x64xf32>
    %368 = vector.extract_strided_slice %367 {offsets = [0, 0], sizes = [8, 32], strides = [1, 1]} : vector<8x64xf32> to vector<8x32xf32>
    %369 = vector.extract_strided_slice %367 {offsets = [0, 32], sizes = [8, 32], strides = [1, 1]} : vector<8x64xf32> to vector<8x32xf32>
    %370 = vector.extract_strided_slice %358 {offsets = [0, 64], sizes = [8, 32], strides = [1, 1]} : vector<8x96xf32> to vector<8x32xf32>
    %371 = vector.extract_strided_slice %359 {offsets = [0, 64], sizes = [8, 32], strides = [1, 1]} : vector<8x96xf32> to vector<8x32xf32>
    %372 = vector.broadcast %11 : vector<1x32xf32> to vector<8x32xf32>
    %373 = arith.addf %371, %372 : vector<8x32xf32>
    %374 = arith.mulf %368, %373 : vector<8x32xf32>
    %375 = arith.addf %370, %374 : vector<8x32xf32>
    %376 = math.tanh %375 : vector<8x32xf32>
    %377 = arith.subf %357, %376 : vector<8x32xf32>
    %378 = arith.mulf %369, %377 : vector<8x32xf32>
    %379 = arith.addf %376, %378 : vector<8x32xf32>
    %380 = vector.extract_strided_slice %223 {offsets = [56, 0], sizes = [8, 96], strides = [1, 1]} : vector<64x96xf32> to vector<8x96xf32>
    %cst_61 = arith.constant dense<0.000000e+00> : vector<8x96xf32>
    %381 = tpu.matmul %379, %1, %cst_61 {dimension_numbers = #tpu.dot_dimension_numbers<[1], [0], [0], [1], [0, 0, 1, 1], [], []>} : vector<8x32xf32>, vector<32x96xf32>, vector<8x96xf32> -> vector<8x96xf32>
    %382 = vector.extract_strided_slice %380 {offsets = [0, 0], sizes = [8, 64], strides = [1, 1]} : vector<8x96xf32> to vector<8x64xf32>
    %383 = vector.extract_strided_slice %381 {offsets = [0, 0], sizes = [8, 64], strides = [1, 1]} : vector<8x96xf32> to vector<8x64xf32>
    %384 = arith.addf %382, %383 : vector<8x64xf32>
    %385 = arith.negf %384 : vector<8x64xf32>
    %386 = math.exp %385 : vector<8x64xf32>
    %cst_62 = arith.constant 1.000000e+00 : f32
    %387 = vector.broadcast %cst_62 : f32 to vector<8x64xf32>
    %388 = arith.addf %387, %386 : vector<8x64xf32>
    %389 = arith.divf %387, %388 : vector<8x64xf32>
    %390 = vector.extract_strided_slice %389 {offsets = [0, 0], sizes = [8, 32], strides = [1, 1]} : vector<8x64xf32> to vector<8x32xf32>
    %391 = vector.extract_strided_slice %389 {offsets = [0, 32], sizes = [8, 32], strides = [1, 1]} : vector<8x64xf32> to vector<8x32xf32>
    %392 = vector.extract_strided_slice %380 {offsets = [0, 64], sizes = [8, 32], strides = [1, 1]} : vector<8x96xf32> to vector<8x32xf32>
    %393 = vector.extract_strided_slice %381 {offsets = [0, 64], sizes = [8, 32], strides = [1, 1]} : vector<8x96xf32> to vector<8x32xf32>
    %394 = vector.broadcast %11 : vector<1x32xf32> to vector<8x32xf32>
    %395 = arith.addf %393, %394 : vector<8x32xf32>
    %396 = arith.mulf %390, %395 : vector<8x32xf32>
    %397 = arith.addf %392, %396 : vector<8x32xf32>
    %398 = math.tanh %397 : vector<8x32xf32>
    %399 = arith.subf %379, %398 : vector<8x32xf32>
    %400 = arith.mulf %391, %399 : vector<8x32xf32>
    %401 = arith.addf %398, %400 : vector<8x32xf32>
    %c1_63 = arith.constant 1 : index
    %c0_64 = arith.constant 0 : index
    %c0_65 = arith.constant 0 : index
    %402 = vector.load %arg5[%c1_63, %c0_64, %c0_65] : memref<2x8x32xf32, #tpu.memory_space<vmem>>, vector<1x8x32xf32>
    %403 = vector.shape_cast %402 : vector<1x8x32xf32> to vector<8x32xf32>
    %404 = vector.shape_cast %401 : vector<8x32xf32> to vector<1x8x32xf32>
    tpu.vector_store %arg5[%c1_63, %c0_64, %c0_65], %404 {strides = array<i32>} : memref<2x8x32xf32, #tpu.memory_space<vmem>>, vector<1x8x32xf32>,
    %405 = tpu.concatenate %247, %269, %291, %313, %335, %357, %379, %401 in 0 : vector<8x32xf32>, vector<8x32xf32>, vector<8x32xf32>, vector<8x32xf32>, vector<8x32xf32>, vector<8x32xf32>, vector<8x32xf32>, vector<8x32xf32> -> vector<64x32xf32>
    %406 = tpu.concatenate %28, %28, %28, %28, %28, %28, %28, %28 in 0 : vector<8x1xf32>, vector<8x1xf32>, vector<8x1xf32>, vector<8x1xf32>, vector<8x1xf32>, vector<8x1xf32>, vector<8x1xf32>, vector<8x1xf32> -> vector<64x1xf32>
    %407 = vector.broadcast %6 : vector<1x32xf32> to vector<64x32xf32>
    %408 = arith.mulf %405, %407 : vector<64x32xf32>
    %cst_66 = arith.constant dense<0.000000e+00> : vector<64xf32>
    %409 = vector.multi_reduction <add>, %408, %cst_66 [1] : vector<64x32xf32> to vector<64xf32>
    %410 = vector.shape_cast %409 : vector<64xf32> to vector<64x1xf32>
    %411 = arith.addf %410, %406 : vector<64x1xf32>
    %cst_67 = arith.constant 0.000000e+00 : f32
    %412 = vector.broadcast %cst_67 : f32 to vector<64x1xf32>
    %413 = arith.maximumf %411, %412 : vector<64x1xf32>
    %c0_68 = arith.constant 0 : index
    %c0_69 = arith.constant 0 : index
    %414 = vector.load %arg4[%c0_68, %c0_69] : memref<64x1xf32, #tpu.memory_space<vmem>>, vector<64x1xf32>
    tpu.vector_store %arg4[%c0_68, %c0_69], %413 {strides = array<i32>} : memref<64x1xf32, #tpu.memory_space<vmem>>, vector<64x1xf32>,
    return
  }
}

</mosaic_0001>

<bundles_post_ra>
// kernel: one_step_network.1
= control target key start
LH: loop header
LB: loop body
LE: loop exit
PB: predicated region body
PF: predicated region fallthrough
CT: control target
= control target key end

     0   :  { %vm51_vm0 = vcmask 1041408   ;;  %vm141_vm1 = vcmask 1043456   ;;  %vm47_vm2 = vcmask 15360   ;;  %vm116_vm3 = vcmask 31744   ;;  %s1621_s20 = smov 64   ;;  %s1622_s12 = smov 32   ;;  %s2141_s3 = inlined_call_operand.vmem [shape: f32[144,128], index: 3, kind: input, shape index: {}]   ;;  %s2142_s1 = inlined_call_operand.vmem [shape: f32[8,2], index: 1, kind: input, shape index: {}]   ;;  %s2143_s0 = inlined_call_operand.vmem [shape: f32[64,4], index: 0, kind: input, shape index: {}]   ;;  %s2144_s2 = inlined_call_operand.vmem [shape: f32[2,8,32], index: 2, kind: input, shape index: {}, may-alias: {2,5}]   ;;  %s2145_s5 = inlined_call_operand.vmem [shape: f32[2,8,32], index: 5, kind: output, shape index: {1}, may-alias: {2,5}]   ;;  %s2146_s4 = inlined_call_operand.vmem [shape: f32[64,1], index: 4, kind: output, shape index: {0}]  }
   0x1   :  { %v36_v0 = vld [vmem:[%s2141_s3 + $0x84] sm:$0x3]  ;;  %v35_v1 = vld [vmem:[%s2141_s3 + $0x80] sm:$0xf]  ;;  %v1669_v4 = vld [vmem:[%s2141_s3 + $0x18] sm:$0xff]  ;;  %vm77_vm4 = vcmask 261120  }
   0x2   :  { %v45_v2 = vld [vmem:[%s2142_s1] sm:$0xff]  ;;  %1456 = vmatpush.msk.msra.mxu0 %vm51_vm0, %v36_v0  ;;  %1459 = vmatpush.msk.msra.mxu2 %vm141_vm1, %v35_v1  ;;  %v1675_v5 = vld [vmem:[%s2141_s3 + $0x10] sm:$0xff]  ;;  %v1681_v6 = vld [vmem:[%s2141_s3 + $0x8] sm:$0xff]  ;;  %s1623_s13 = smov 96  }
   0x3   :  { %v108_v3 = vld [vmem:[%s2143_s0] sm:$0xff]  ;;  %1457 = vmatmul.msk.f32.vlgmr.msra.gmra.mxu0 %vm47_vm2, %v45_v2  ;;  %350 = vmatpush.msra.mxu1 %v1669_v4  ;;  %v109_v7 = vld [vmem:[%s2143_s0 + $0x8] sm:$0xff]  ;;  %v110_v8 = vld [vmem:[%s2143_s0 + $0x10] sm:$0xff] }
   0x4   :  { %1460 = vmatmul.msk.f32.vlgmr.msra.gmra.mxu2 %vm116_vm3, %v108_v3  ;;  %419 = vmatpush.msra.mxu3 %v1669_v4  ;;  %v1702_v9 = vld [vmem:[%s2141_s3] sm:$0xff]  ;;  %v111_v10 = vld [vmem:[%s2143_s0 + $0x18] sm:$0xff]  ;;  %v1517_v12 = vld [vmem:[%s2141_s3 + $0x8a] ss:$0 sm:$0xff] }
   0x5   :  { %203 = vmatpush.msrb.mxu2 %v1669_v4  ;;  %351 = vmatpush.msra.mxu1 %v1675_v5  ;;  %v112_v11 = vld [vmem:[%s2143_s0 + $0x20] sm:$0xff]  ;;  %v30_v13 = vld [vmem:[%s2141_s3 + $0x58] sm:$0xff]  ;;  %v113_v14 = vld [vmem:[%s2143_s0 + $0x28] sm:$0xff] }
   0x6   :  { %420 = vmatpush.msra.mxu3 %v1675_v5  ;;  %93 = vmatpush.msrb.mxu0 %v30_v13  ;;  %v114_v15 = vld [vmem:[%s2143_s0 + $0x30] sm:$0xff]  ;;  %v115_v16 = vld [vmem:[%s2143_s0 + $0x38] sm:$0xff]  ;;  %v1745_v17 = vld [vmem:[%s2144_s2] sm:$0xff] }
   0x7   :  { %204 = vmatpush.msrb.mxu2 %v1675_v5  ;;  %352 = vmatpush.msra.mxu1 %v1681_v6  ;;  %v29_v18 = vld [vmem:[%s2141_s3 + $0x50] sm:$0xff]  ;;  %v28_v19 = vld [vmem:[%s2141_s3 + $0x48] sm:$0xff]  ;;  %v27_v20 = vld [vmem:[%s2141_s3 + $0x40] sm:$0xff] }
   0x8   :  { %421 = vmatpush.msra.mxu3 %v1681_v6  ;;  %233 = vrot.lane.b32.xlu0 %v1517_v12, %s1621_s20  ;;  %v1518_v21 = vld [vmem:[%s2141_s3 + $0x8c] ss:$0 sm:$0xff]  ;;  %v1519_v36 = vld [vmem:[%s2141_s3 + $0x88] ss:$0 sm:$0xff] }
   0x9   :  { %205 = vmatpush.msrb.mxu2 %v1681_v6  ;;  %353 = vmatpush.msra.mxu1 %v1702_v9 }
   0xa   :  { %422 = vmatpush.msra.mxu3 %v1702_v9  ;;  %94 = vmatpush.msrb.mxu0 %v29_v18 }
   0xb   :  { %206 = vmatpush.msrb.mxu2 %v1702_v9  ;;  %557 = vmatpush.msrb.mxu1 %v1669_v4 }
   0xc   :  { %1461 = vmatmul.msk.f32.gmra.mxu2 %vm116_vm3, %v109_v7  ;;  %626 = vmatpush.msrb.mxu3 %v1669_v4 }
   0xd   :  { %558 = vmatpush.msrb.mxu1 %v1675_v5  ;;  %95 = vmatpush.msrb.mxu0 %v28_v19 }
   0xe   :  { %627 = vmatpush.msrb.mxu3 %v1675_v5 }
   0xf   :  { %559 = vmatpush.msrb.mxu1 %v1681_v6  ;;  %96 = vmatpush.msrb.mxu0 %v27_v20 }
  0x10   :  { %628 = vmatpush.msrb.mxu3 %v1681_v6 }
  0x11   :  { %560 = vmatpush.msrb.mxu1 %v1702_v9  ;;  %281 = vmatpush.msra.mxu0 %v1669_v4 }
  0x12   :  { %629 = vmatpush.msrb.mxu3 %v1702_v9 }
  0x13   :  { %282 = vmatpush.msra.mxu0 %v1675_v5 }
  0x14   :  { %1462 = vmatmul.msk.f32.gmra.mxu2 %vm116_vm3, %v110_v8 }
  0x15   :  { %283 = vmatpush.msra.mxu0 %v1681_v6 }
  0x17   :  { %284 = vmatpush.msra.mxu0 %v1702_v9 }
  0x1c   :  { %1463 = vmatmul.msk.f32.gmra.mxu2 %vm116_vm3, %v111_v10 }
  0x24   :  { %1464 = vmatmul.msk.f32.gmra.mxu2 %vm116_vm3, %v112_v11 }
  0x2c   :  { %1465 = vmatmul.msk.f32.gmra.mxu2 %vm116_vm3, %v113_v14 }
  0x34   :  { %1466 = vmatmul.msk.f32.gmra.mxu2 %vm116_vm3, %v114_v15 }
  0x3c   :  { %1467 = vmatmul.msk.f32.gmra.mxu2 %vm116_vm3, %v115_v16 }
  0x44   :  { %1468 = vmatmul.msk.f32.vlgmr.msrb.gmra.mxu2 %vm77_vm4, %v1745_v17 }
  0x7a   :  { %v1787_v33 = vpop.permute.xlu0 %233 }
  0x80   :  { %v72_v22 = vpop.f32.mrf.mxu0 }
  0x81   :  { %v1765_v23 = vadd.f32 %v1518_v21, %v72_v22 }
  0x83   :  { %v75_v24 = vmax.f32 %v1765_v23, 0.0 }
  0x85   :  { %1458 = vmatmul.msk.f32.vlgmr.msrb.gmra.mxu0 %vm77_vm4, %v75_v24 }
  0x86   :  { %488 = vmatpush.msrb.mxu0 %v1669_v4 }
  0x87   :  { %v162_v25 = vpop.f32.mrf.mxu2 }
  0x88   :  { %489 = vmatpush.msrb.mxu0 %v1675_v5 }
  0x8a   :  { %490 = vmatpush.msrb.mxu0 %v1681_v6 }
  0x8c   :  { %491 = vmatpush.msrb.mxu0 %v1702_v9 }
  0x8f   :  { %v1775_v26 = vpop.f32.mrf.mxu2 }
  0x97   :  { %v1777_v27 = vpop.f32.mrf.mxu2 }
  0x9f   :  { %v1779_v28 = vpop.f32.mrf.mxu2 }
  0xa7   :  { %v1781_v29 = vpop.f32.mrf.mxu2 }
  0xaf   :  { %v1783_v30 = vpop.f32.mrf.mxu2 }
  0xb7   :  { %v1785_v31 = vpop.f32.mrf.mxu2 }
  0xbf   :  { %v183_v32 = vpop.f32.mrf.mxu2 }
  0xc7   :  { %v208_v34 = vpop.f32.mrf.mxu2 }
  0xc8   :  { %v236_v35 = vadd.f32 %v1787_v33, %v208_v34 }
  0xca   :  { %238 = vrot.lane.b32.xlu0 %v236_v35, %s1621_s20 }
 0x102   :  { %v98_v37 = vpop.f32.mrf.mxu0 }
 0x103   :  { %v1794_v38 = vadd.f32 %v1519_v36, %v98_v37 }
 0x105   :  { %v187_v39 = vadd.f32 %v162_v25, %v1794_v38  ;;  %v1798_v40 = vadd.f32 %v183_v32, %v1794_v38  ;;  %v263_v8 = vadd.f32 %v1775_v26, %v1794_v38 }
 0x107   :  { %v211_v41 = vadd.f32 %v208_v34, %v187_v39 }
 0x109   :  { %v1469_v42 = vmul.f32 -1.442695, %v211_v41 }
 0x10b   :  { %1525 = vpow2.f32 %v1469_v42 }
 0x111   :  { %v1526_v43 = vpop.eup %1525 }
 0x112   :  { %v215_v44 = vadd.f32 1.0, %v1526_v43  ;;  %v332_v43 = vadd.f32 %v1777_v27, %v1794_v38 }
 0x114   :  { %1527 = vrcp.f32 %v215_v44  ;;  %v227_v50 = vand.u32 2147483648, %v215_v44  ;;  %vm221_vm6 = vweird.f32 %v215_v44  ;;  %v225_v51 = vand.u32 2147483647, %v215_v44 }
 0x116   :  { %v228_v53 = vor.u32 1.1754944e-38, %v227_v50  ;;  %vm226_vm8 = vcmp.eq.f32.partialorder %v225_v51, 8.507059e+37 }
 0x11a   :  { %v1528_v45 = vpop.eup %1527 }
 0x11b   :  { %v217_v46 = vmul.f32 %v1528_v45, %v215_v44  ;;  %vm222_vm5 = vweird.f32 %v1528_v45 }
 0x11c   :  { %vm223_vm7 = vmor %vm221_vm6, %vm222_vm5 }
 0x11d   :  { %v218_v47 = vsub.f32 1.0, %v217_v46 }
 0x11f   :  { %v219_v48 = vmul.f32 %v1528_v45, %v218_v47 }
 0x121   :  { %v220_v49 = vadd.f32 %v1528_v45, %v219_v48 }
 0x123   :  { %v224_v52 = vsel %vm223_vm7, %v1528_v45, %v220_v49 }
 0x124   :  { %v229_v55 = vsel %vm226_vm8, %v228_v53, %v224_v52 }
 0x13c   :  { %v239_v54 = vpop.permute.xlu0 %238 }
 0x13d   :  { %v241_v56 = vmul.f32 %v239_v54, %v229_v55 }
 0x13f   :  { %243 = vrot.lane.b32.xlu1 %v241_v56, %s1621_s20 }
 0x1b1   :  { %v244_v57 = vpop.permute.xlu1 %243 }
 0x1b2   :  { %v246_v58 = vadd.f32 %v244_v57, %v187_v39 }
 0x1b4   :  { %1529 = vtanh.f32 %v246_v58 }
 0x1ba   :  { %v1530_v59 = vpop.eup %1529 }
 0x1bb   :  { %249 = vrot.lane.b32.xlu1 %v1530_v59, %s1621_s20 }
 0x22d   :  { %v250_v60 = vpop.permute.xlu1 %249 }
 0x22e   :  { %v252_v61 = vsub.f32 %v1745_v17, %v250_v60 }
 0x230   :  { %254 = vrot.lane.b32.xlu2 %v252_v61, %s1622_s12 }
 0x28a   :  { %v255_v62 = vpop.permute.xlu2 %254 }
 0x28b   :  { %v257_v63 = vmul.f32 %v255_v62, %v229_v55 }
 0x28d   :  { %259 = vrot.lane.b32.xlu2 %v257_v63, %s1622_s12 }
 0x2e7   :  { %v260_v0 = vpop.permute.xlu2 %259 }
 0x2e8   :  { %v262_v1 = vadd.f32 %v1530_v59, %v260_v0 }
 0x2ea   :  { %265 = vrot.lane.b32.xlu0 %v262_v1, %s1621_s20 }
 0x35c   :  { %v1806_v2 = vpop.permute.xlu0 %265 }
 0x35d   :  { %1470 = vmatmul.msk.f32.vlgmr.msra.gmra.mxu0 %vm77_vm4, %v1806_v2 }
 0x35e   :  { %695 = vmatpush.msra.mxu0 %v1669_v4 }
 0x360   :  { %696 = vmatpush.msra.mxu0 %v1675_v5 }
 0x362   :  { %697 = vmatpush.msra.mxu0 %v1681_v6 }
 0x364   :  { %698 = vmatpush.msra.mxu0 %v1702_v9 }
 0x3da   :  { %v286_v3 = vpop.f32.mrf.mxu0 }
 0x3db   :  { %v309_v7 = vadd.f32 %v286_v3, %v1787_v33  ;;  %v289_v10 = vadd.f32 %v286_v3, %v263_v8 }
 0x3dd   :  { %311 = vrot.lane.b32.xlu1 %v309_v7, %s1621_s20  ;;  %v1471_v11 = vmul.f32 -1.442695, %v289_v10 }
 0x3df   :  { %1531 = vpow2.f32 %v1471_v11  ;;  %v401_v11 = vadd.f32 %v1779_v28, %v1794_v38 }
 0x3e5   :  { %v1532_v12 = vpop.eup %1531 }
 0x3e6   :  { %v293_v13 = vadd.f32 1.0, %v1532_v12 }
 0x3e8   :  { %1533 = vrcp.f32 %v293_v13  ;;  %v305_v9 = vand.u32 2147483648, %v293_v13  ;;  %vm299_vm10 = vweird.f32 %v293_v13  ;;  %v303_v16 = vand.u32 2147483647, %v293_v13 }
 0x3ea   :  { %v306_v18 = vor.u32 1.1754944e-38, %v305_v9  ;;  %vm304_vm12 = vcmp.eq.f32.partialorder %v303_v16, 8.507059e+37 }
 0x3ee   :  { %v1534_v4 = vpop.eup %1533 }
 0x3ef   :  { %v295_v5 = vmul.f32 %v1534_v4, %v293_v13  ;;  %vm300_vm9 = vweird.f32 %v1534_v4 }
 0x3f0   :  { %vm301_vm11 = vmor %vm299_vm10, %vm300_vm9 }
 0x3f1   :  { %v296_v14 = vsub.f32 1.0, %v295_v5 }
 0x3f3   :  { %v297_v6 = vmul.f32 %v1534_v4, %v296_v14 }
 0x3f5   :  { %v298_v15 = vadd.f32 %v1534_v4, %v297_v6 }
 0x3f7   :  { %v302_v17 = vsel %vm301_vm11, %v1534_v4, %v298_v15 }
 0x3f8   :  { %v307_v20 = vsel %vm304_vm12, %v306_v18, %v302_v17 }
 0x44f   :  { %v312_v19 = vpop.permute.xlu1 %311 }
 0x450   :  { %v314_v21 = vmul.f32 %v312_v19, %v307_v20 }
 0x452   :  { %316 = vrot.lane.b32.xlu2 %v314_v21, %s1621_s20 }
 0x4ac   :  { %v317_v22 = vpop.permute.xlu2 %316 }
 0x4ad   :  { %v319_v25 = vadd.f32 %v317_v22, %v263_v8 }
 0x4af   :  { %1535 = vtanh.f32 %v319_v25 }
 0x4b5   :  { %v1536_v26 = vpop.eup %1535 }
 0x4b6   :  { %v321_v32 = vsub.f32 %v262_v1, %v1536_v26 }
 0x4b8   :  { %323 = vrot.lane.b32.xlu0 %v321_v32, %s1623_s13 }
 0x52a   :  { %v324_v34 = vpop.permute.xlu0 %323 }
 0x52b   :  { %v326_v35 = vmul.f32 %v324_v34, %v307_v20 }
 0x52d   :  { %328 = vrot.lane.b32.xlu1 %v326_v35, %s1622_s12 }
 0x59f   :  { %v329_v36 = vpop.permute.xlu1 %328 }
 0x5a0   :  { %v331_v37 = vadd.f32 %v1536_v26, %v329_v36 }
 0x5a2   :  { %334 = vrot.lane.b32.xlu2 %v331_v37, %s1621_s20 }
 0x5fc   :  { %v1822_v39 = vpop.permute.xlu2 %334 }
 0x5fd   :  { %1472 = vmatmul.msk.f32.vlgmr.msra.gmra.mxu1 %vm77_vm4, %v1822_v39 }
 0x67a   :  { %v355_v41 = vpop.f32.mrf.mxu1 }
 0x67b   :  { %v378_v42 = vadd.f32 %v355_v41, %v1787_v33  ;;  %v358_v44 = vadd.f32 %v355_v41, %v332_v43 }
 0x67d   :  { %380 = vrot.lane.b32.xlu0 %v378_v42, %s1621_s20  ;;  %v1473_v45 = vmul.f32 -1.442695, %v358_v44 }
 0x67f   :  { %1537 = vpow2.f32 %v1473_v45  ;;  %v470_v45 = vadd.f32 %v1781_v29, %v1794_v38 }
 0x685   :  { %v1538_v46 = vpop.eup %1537 }
 0x686   :  { %v362_v47 = vadd.f32 1.0, %v1538_v46 }
 0x688   :  { %1539 = vrcp.f32 %v362_v47  ;;  %v374_v53 = vand.u32 2147483648, %v362_v47  ;;  %vm368_vm14 = vweird.f32 %v362_v47  ;;  %v372_v54 = vand.u32 2147483647, %v362_v47 }
 0x68a   :  { %v375_v56 = vor.u32 1.1754944e-38, %v374_v53  ;;  %vm373_vm0 = vcmp.eq.f32.partialorder %v372_v54, 8.507059e+37 }
 0x68e   :  { %v1540_v48 = vpop.eup %1539 }
 0x68f   :  { %v364_v49 = vmul.f32 %v1540_v48, %v362_v47  ;;  %vm369_vm13 = vweird.f32 %v1540_v48 }
 0x690   :  { %vm370_vm15 = vmor %vm368_vm14, %vm369_vm13 }
 0x691   :  { %v365_v50 = vsub.f32 1.0, %v364_v49 }
 0x693   :  { %v366_v51 = vmul.f32 %v1540_v48, %v365_v50 }
 0x695   :  { %v367_v52 = vadd.f32 %v1540_v48, %v366_v51 }
 0x697   :  { %v371_v55 = vsel %vm370_vm15, %v1540_v48, %v367_v52 }
 0x698   :  { %v376_v57 = vsel %vm373_vm0, %v375_v56, %v371_v55 }
 0x6ef   :  { %v381_v27 = vpop.permute.xlu0 %380 }
 0x6f0   :  { %v383_v58 = vmul.f32 %v381_v27, %v376_v57 }
 0x6f2   :  { %385 = vrot.lane.b32.xlu1 %v383_v58, %s1621_s20 }
 0x764   :  { %v386_v59 = vpop.permute.xlu1 %385 }
 0x765   :  { %v388_v60 = vadd.f32 %v386_v59, %v332_v43 }
 0x767   :  { %1541 = vtanh.f32 %v388_v60 }
 0x76d   :  { %v1542_v61 = vpop.eup %1541 }
 0x76e   :  { %v390_v62 = vsub.f32 %v331_v37, %v1542_v61 }
 0x770   :  { %392 = vrot.lane.b32.xlu2 %v390_v62, %s1623_s13 }
 0x7ca   :  { %v393_v63 = vpop.permute.xlu2 %392 }
 0x7cb   :  { %v395_v0 = vmul.f32 %v393_v63, %v376_v57 }
 0x7cd   :  { %397 = vrot.lane.b32.xlu0 %v395_v0, %s1622_s12 }
 0x83f   :  { %v398_v1 = vpop.permute.xlu0 %397 }
 0x840   :  { %v400_v3 = vadd.f32 %v1542_v61, %v398_v1 }
 0x842   :  { %403 = vrot.lane.b32.xlu1 %v400_v3, %s1621_s20 }
 0x8b4   :  { %v1834_v7 = vpop.permute.xlu1 %403 }
 0x8b5   :  { %1474 = vmatmul.msk.f32.vlgmr.msra.gmra.mxu3 %vm77_vm4, %v1834_v7 }
 0x938   :  { %v424_v8 = vpop.f32.mrf.mxu3 }
 0x939   :  { %v447_v10 = vadd.f32 %v424_v8, %v1787_v33  ;;  %v427_v12 = vadd.f32 %v424_v8, %v401_v11 }
 0x93b   :  { %449 = vrot.lane.b32.xlu2 %v447_v10, %s1621_s20  ;;  %v1475_v13 = vmul.f32 -1.442695, %v427_v12  ;;  %v34_v10 = vld [vmem:[%s2141_s3 + $0x78] sm:$0xff]  ;;  %v32_v12 = vld [vmem:[%s2141_s3 + $0x68] sm:$0xff] }
 0x93c   :  { %766 = vmatpush.msra.mxu1 %v34_v10  ;;  %1510 = vmatpush.msra.mxu3 %v34_v10 }
 0x93d   :  { %1543 = vpow2.f32 %v1475_v13  ;;  %v31_v13 = vld [vmem:[%s2141_s3 + $0x60] sm:$0xff] }
 0x943   :  { %v1544_v4 = vpop.eup %1543 }
 0x944   :  { %v431_v5 = vadd.f32 1.0, %v1544_v4 }
 0x946   :  { %1545 = vrcp.f32 %v431_v5  ;;  %v443_v17 = vand.u32 2147483648, %v431_v5  ;;  %vm437_vm2 = vweird.f32 %v431_v5  ;;  %v441_v18 = vand.u32 2147483647, %v431_v5 }
 0x948   :  { %v444_v20 = vor.u32 1.1754944e-38, %v443_v17  ;;  %vm442_vm5 = vcmp.eq.f32.partialorder %v441_v18, 8.507059e+37 }
 0x94c   :  { %v1546_v14 = vpop.eup %1545 }
 0x94d   :  { %v433_v6 = vmul.f32 %v1546_v14, %v431_v5  ;;  %vm438_vm1 = vweird.f32 %v1546_v14 }
 0x94e   :  { %vm439_vm3 = vmor %vm437_vm2, %vm438_vm1 }
 0x94f   :  { %v434_v15 = vsub.f32 1.0, %v433_v6  ;;  %v539_v6 = vadd.f32 %v1783_v30, %v1794_v38 }
 0x951   :  { %v435_v9 = vmul.f32 %v1546_v14, %v434_v15 }
 0x953   :  { %v436_v16 = vadd.f32 %v1546_v14, %v435_v9 }
 0x955   :  { %v440_v19 = vsel %vm439_vm3, %v1546_v14, %v436_v16 }
 0x956   :  { %v445_v21 = vsel %vm442_vm5, %v444_v20, %v440_v19 }
 0x995   :  { %v450_v28 = vpop.permute.xlu2 %449 }
 0x996   :  { %v452_v22 = vmul.f32 %v450_v28, %v445_v21 }
 0x998   :  { %454 = vrot.lane.b32.xlu0 %v452_v22, %s1621_s20 }
 0xa0a   :  { %v455_v25 = vpop.permute.xlu0 %454 }
 0xa0b   :  { %v457_v26 = vadd.f32 %v455_v25, %v401_v11  ;;  %v33_v11 = vld [vmem:[%s2141_s3 + $0x70] sm:$0xff] }
 0xa0c   :  { %767 = vmatpush.msra.mxu1 %v33_v11  ;;  %1511 = vmatpush.msra.mxu3 %v33_v11 }
 0xa0d   :  { %1547 = vtanh.f32 %v457_v26 }
 0xa0e   :  { %768 = vmatpush.msra.mxu1 %v32_v12  ;;  %1512 = vmatpush.msra.mxu3 %v32_v12 }
 0xa10   :  { %769 = vmatpush.msra.mxu1 %v31_v13  ;;  %1513 = vmatpush.msra.mxu3 %v31_v13 }
 0xa13   :  { %v1548_v32 = vpop.eup %1547 }
 0xa14   :  { %v459_v34 = vsub.f32 %v400_v3, %v1548_v32 }
 0xa16   :  { %461 = vrot.lane.b32.xlu1 %v459_v34, %s1623_s13 }
 0xa88   :  { %v462_v35 = vpop.permute.xlu1 %461 }
 0xa89   :  { %v464_v36 = vmul.f32 %v462_v35, %v445_v21 }
 0xa8b   :  { %466 = vrot.lane.b32.xlu2 %v464_v36, %s1622_s12 }
 0xae5   :  { %v467_v37 = vpop.permute.xlu2 %466 }
 0xae6   :  { %v469_v41 = vadd.f32 %v1548_v32, %v467_v37 }
 0xae8   :  { %472 = vrot.lane.b32.xlu0 %v469_v41, %s1621_s20 }
 0xb5a   :  { %v473_v42 = vpop.permute.xlu0 %472 }
 0xb5b   :  { %1476 = vmatmul.msk.f32.vlgmr.msrb.gmra.mxu0 %vm77_vm4, %v473_v42 }
 0xbd8   :  { %v493_v43 = vpop.f32.mrf.mxu0 }
 0xbd9   :  { %v516_v44 = vadd.f32 %v493_v43, %v1787_v33  ;;  %v496_v46 = vadd.f32 %v493_v43, %v470_v45 }
 0xbdb   :  { %518 = vrot.lane.b32.xlu1 %v516_v44, %s1621_s20  ;;  %v1477_v47 = vmul.f32 -1.442695, %v496_v46 }
 0xbdd   :  { %1549 = vpow2.f32 %v1477_v47  ;;  %v608_v47 = vadd.f32 %v1785_v31, %v1794_v38 }
 0xbe3   :  { %v1550_v48 = vpop.eup %1549 }
 0xbe4   :  { %v500_v49 = vadd.f32 1.0, %v1550_v48 }
 0xbe6   :  { %1551 = vrcp.f32 %v500_v49  ;;  %v512_v55 = vand.u32 2147483648, %v500_v49  ;;  %vm506_vm7 = vweird.f32 %v500_v49  ;;  %v510_v56 = vand.u32 2147483647, %v500_v49 }
 0xbe8   :  { %v513_v57 = vor.u32 1.1754944e-38, %v512_v55  ;;  %vm511_vm9 = vcmp.eq.f32.partialorder %v510_v56, 8.507059e+37 }
 0xbec   :  { %v1552_v50 = vpop.eup %1551 }
 0xbed   :  { %v502_v51 = vmul.f32 %v1552_v50, %v500_v49  ;;  %vm507_vm6 = vweird.f32 %v1552_v50 }
 0xbee   :  { %vm508_vm8 = vmor %vm506_vm7, %vm507_vm6 }
 0xbef   :  { %v503_v52 = vsub.f32 1.0, %v502_v51 }
 0xbf1   :  { %v504_v53 = vmul.f32 %v1552_v50, %v503_v52 }
 0xbf3   :  { %v505_v54 = vadd.f32 %v1552_v50, %v504_v53 }
 0xbf5   :  { %v509_v27 = vsel %vm508_vm8, %v1552_v50, %v505_v54 }
 0xbf6   :  { %v514_v58 = vsel %vm511_vm9, %v513_v57, %v509_v27 }
 0xc4d   :  { %v519_v29 = vpop.permute.xlu1 %518 }
 0xc4e   :  { %v521_v59 = vmul.f32 %v519_v29, %v514_v58 }
 0xc50   :  { %523 = vrot.lane.b32.xlu2 %v521_v59, %s1621_s20 }
 0xcaa   :  { %v524_v60 = vpop.permute.xlu2 %523 }
 0xcab   :  { %v526_v61 = vadd.f32 %v524_v60, %v470_v45 }
 0xcad   :  { %1553 = vtanh.f32 %v526_v61 }
 0xcb3   :  { %v1554_v62 = vpop.eup %1553 }
 0xcb4   :  { %v528_v63 = vsub.f32 %v469_v41, %v1554_v62 }
 0xcb6   :  { %530 = vrot.lane.b32.xlu0 %v528_v63, %s1623_s13 }
 0xd28   :  { %v531_v0 = vpop.permute.xlu0 %530 }
 0xd29   :  { %v533_v1 = vmul.f32 %v531_v0, %v514_v58 }
 0xd2b   :  { %535 = vrot.lane.b32.xlu1 %v533_v1, %s1622_s12 }
 0xd9d   :  { %v536_v3 = vpop.permute.xlu1 %535 }
 0xd9e   :  { %v538_v8 = vadd.f32 %v1554_v62, %v536_v3 }
 0xda0   :  { %541 = vrot.lane.b32.xlu2 %v538_v8, %s1621_s20 }
 0xdfa   :  { %v542_v4 = vpop.permute.xlu2 %541 }
 0xdfb   :  { %1478 = vmatmul.msk.f32.vlgmr.msrb.gmra.mxu1 %vm77_vm4, %v542_v4 }
 0xe03   :  { %1484 = vmatmul.msk.f32.vlgmr.msra.gmra.mxu1 %vm77_vm4, %v1806_v2 }
 0xe0b   :  { %1485 = vmatmul.msk.f32.gmra.mxu1 %vm77_vm4, %v1822_v39 }
 0xe13   :  { %1486 = vmatmul.msk.f32.gmra.mxu1 %vm77_vm4, %v1834_v7 }
 0xe1b   :  { %1487 = vmatmul.msk.f32.gmra.mxu1 %vm77_vm4, %v473_v42 }
 0xe23   :  { %1488 = vmatmul.msk.f32.gmra.mxu1 %vm77_vm4, %v542_v4 }
 0xe78   :  { %v562_v5 = vpop.f32.mrf.mxu1 }
 0xe79   :  { %v585_v14 = vadd.f32 %v562_v5, %v1787_v33  ;;  %v565_v15 = vadd.f32 %v562_v5, %v539_v6 }
 0xe7b   :  { %587 = vrot.lane.b32.xlu0 %v585_v14, %s1621_s20  ;;  %v1479_v2 = vmul.f32 -1.442695, %v565_v15 }
 0xe7d   :  { %1555 = vpow2.f32 %v1479_v2 }
 0xe83   :  { %v1556_v9 = vpop.eup %1555 }
 0xe84   :  { %v569_v39 = vadd.f32 1.0, %v1556_v9 }
 0xe86   :  { %1557 = vrcp.f32 %v569_v39  ;;  %v581_v20 = vand.u32 2147483648, %v569_v39  ;;  %vm575_vm11 = vweird.f32 %v569_v39  ;;  %v579_v28 = vand.u32 2147483647, %v569_v39 }
 0xe88   :  { %v582_v22 = vor.u32 1.1754944e-38, %v581_v20  ;;  %vm580_vm13 = vcmp.eq.f32.partialorder %v579_v28, 8.507059e+37 }
 0xe8c   :  { %v1558_v16 = vpop.eup %1557 }
 0xe8d   :  { %v571_v7 = vmul.f32 %v1558_v16, %v569_v39  ;;  %vm576_vm10 = vweird.f32 %v1558_v16 }
 0xe8e   :  { %vm577_vm12 = vmor %vm575_vm11, %vm576_vm10 }
 0xe8f   :  { %v572_v17 = vsub.f32 1.0, %v571_v7 }
 0xe91   :  { %v573_v18 = vmul.f32 %v1558_v16, %v572_v17 }
 0xe93   :  { %v574_v19 = vadd.f32 %v1558_v16, %v573_v18 }
 0xe95   :  { %v578_v21 = vsel %vm577_vm12, %v1558_v16, %v574_v19 }
 0xe96   :  { %v583_v25 = vsel %vm580_vm13, %v582_v22, %v578_v21 }
 0xeed   :  { %v588_v30 = vpop.permute.xlu0 %587 }
 0xeee   :  { %v590_v26 = vmul.f32 %v588_v30, %v583_v25 }
 0xef0   :  { %592 = vrot.lane.b32.xlu1 %v590_v26, %s1621_s20 }
 0xf62   :  { %v593_v32 = vpop.permute.xlu1 %592 }
 0xf63   :  { %v595_v34 = vadd.f32 %v593_v32, %v539_v6  ;;  %v1906_v32 = vld [vmem:[%s2141_s3 + $0x38] sm:$0xff] }
 0xf64   :  { %889 = vmatpush.msrb.mxu0 %v1906_v32 }
 0xf65   :  { %1559 = vtanh.f32 %v595_v34  ;;  %v1911_v34 = vld [vmem:[%s2141_s3 + $0x30] sm:$0xff] }
 0xf66   :  { %890 = vmatpush.msrb.mxu0 %v1911_v34 }
 0xf6b   :  { %v1560_v35 = vpop.eup %1559 }
 0xf6c   :  { %v597_v36 = vsub.f32 %v538_v8, %v1560_v35 }
 0xf6e   :  { %599 = vrot.lane.b32.xlu2 %v597_v36, %s1623_s13  ;;  %v1921_v36 = vld [vmem:[%s2141_s3 + $0x28] sm:$0xff] }
 0xf6f   :  { %891 = vmatpush.msrb.mxu0 %v1921_v36 }
 0xfc8   :  { %v600_v37 = vpop.permute.xlu2 %599 }
 0xfc9   :  { %v602_v41 = vmul.f32 %v600_v37, %v583_v25  ;;  %v1926_v37 = vld [vmem:[%s2141_s3 + $0x20] sm:$0xff] }
 0xfca   :  { %892 = vmatpush.msrb.mxu0 %v1926_v37 }
 0xfcb   :  { %604 = vrot.lane.b32.xlu0 %v602_v41, %s1622_s12  ;;  %v1521_v41 = vld [vmem:[%s2141_s3 + $0x8b] ss:$0 sm:$0xff] }
0x103d   :  { %v605_v42 = vpop.permute.xlu0 %604 }
0x103e   :  { %v607_v43 = vadd.f32 %v1560_v35, %v605_v42 }
0x1040   :  { %610 = vrot.lane.b32.xlu1 %v607_v43, %s1621_s20 }
0x10b2   :  { %v611_v44 = vpop.permute.xlu1 %610 }
0x10b3   :  { %1480 = vmatmul.msk.f32.vlgmr.msrb.gmra.mxu3 %vm77_vm4, %v611_v44  ;;  %1489 = vmatmul.msk.f32.gmra.mxu1 %vm77_vm4, %v611_v44 }
0x10b4   :  { %812 = vmatpush.msrb.mxu3 %v1906_v32 }
0x10b6   :  { %813 = vmatpush.msrb.mxu3 %v1911_v34 }
0x10b8   :  { %814 = vmatpush.msrb.mxu3 %v1921_v36 }
0x10ba   :  { %815 = vmatpush.msrb.mxu3 %v1926_v37 }
0x1136   :  { %v631_v45 = vpop.f32.mrf.mxu3 }
0x1137   :  { %v654_v46 = vadd.f32 %v631_v45, %v1787_v33  ;;  %v634_v48 = vadd.f32 %v631_v45, %v608_v47 }
0x1139   :  { %656 = vrot.lane.b32.xlu2 %v654_v46, %s1621_s20  ;;  %v1481_v49 = vmul.f32 -1.442695, %v634_v48 }
0x113b   :  { %1561 = vpow2.f32 %v1481_v49  ;;  %v1968_v49 = vld [vmem:[%s2141_s3 + $0x89] ss:$0 sm:$0xff] }
0x1141   :  { %v1562_v50 = vpop.eup %1561 }
0x1142   :  { %v638_v51 = vadd.f32 1.0, %v1562_v50  ;;  %v771_v50 = vpop.f32.mrf.mxu1 }
0x1144   :  { %1563 = vrcp.f32 %v638_v51  ;;  %v650_v27 = vand.u32 2147483648, %v638_v51  ;;  %vm644_vm15 = vweird.f32 %v638_v51  ;;  %v648_v57 = vand.u32 2147483647, %v638_v51 }
0x1146   :  { %v651_v58 = vor.u32 1.1754944e-38, %v650_v27  ;;  %vm649_vm1 = vcmp.eq.f32.partialorder %v648_v57, 8.507059e+37 }
0x114a   :  { %v1564_v52 = vpop.eup %1563 }
0x114b   :  { %v640_v53 = vmul.f32 %v1564_v52, %v638_v51  ;;  %vm645_vm14 = vweird.f32 %v1564_v52  ;;  %v772_v51 = vadd.f32 %v1968_v49, %v771_v50 }
0x114c   :  { %vm646_vm0 = vmor %vm644_vm15, %vm645_vm14 }
0x114d   :  { %v641_v54 = vsub.f32 1.0, %v640_v53 }
0x114f   :  { %v642_v55 = vmul.f32 %v1564_v52, %v641_v54 }
0x1151   :  { %v643_v56 = vadd.f32 %v1564_v52, %v642_v55 }
0x1153   :  { %v647_v29 = vsel %vm646_vm0, %v1564_v52, %v643_v56 }
0x1154   :  { %v652_v38 = vsel %vm649_vm1, %v651_v58, %v647_v29 }
0x1193   :  { %v657_v31 = vpop.permute.xlu2 %656 }
0x1194   :  { %v659_v59 = vmul.f32 %v657_v31, %v652_v38 }
0x1196   :  { %661 = vrot.lane.b32.xlu0 %v659_v59, %s1621_s20 }
0x1208   :  { %v662_v60 = vpop.permute.xlu0 %661 }
0x1209   :  { %v664_v61 = vadd.f32 %v662_v60, %v608_v47 }
0x120b   :  { %1565 = vtanh.f32 %v664_v61 }
0x1211   :  { %v1566_v62 = vpop.eup %1565 }
0x1212   :  { %v666_v63 = vsub.f32 %v607_v43, %v1566_v62 }
0x1214   :  { %668 = vrot.lane.b32.xlu1 %v666_v63, %s1623_s13 }
0x1286   :  { %v669_v0 = vpop.permute.xlu1 %668 }
0x1287   :  { %v671_v1 = vmul.f32 %v669_v0, %v652_v38 }
0x1289   :  { %673 = vrot.lane.b32.xlu2 %v671_v1, %s1622_s12 }
0x12e3   :  { %v674_v3 = vpop.permute.xlu2 %673 }
0x12e4   :  { %v676_v8 = vadd.f32 %v1566_v62, %v674_v3 }
0x12e6   :  { %679 = vrot.lane.b32.xlu0 %v676_v8, %s1621_s20 }
0x1358   :  { %v680_v10 = vpop.permute.xlu0 %679 }
0x1359   :  { %1482 = vmatmul.msk.f32.vlgmr.msra.gmra.mxu0 %vm77_vm4, %v680_v10  ;;  %1490 = vmatmul.msk.f32.vlgmr.msra.gmra.mxu3 %vm77_vm4, %v680_v10 }
0x135a   :  { %957 = vmatpush.msra.mxu3 %v1906_v32  ;;  %1025 = vmatpush.msra.mxu0 %v1906_v32 }
0x135c   :  { %958 = vmatpush.msra.mxu3 %v1911_v34  ;;  %1026 = vmatpush.msra.mxu0 %v1911_v34 }
0x135e   :  { %959 = vmatpush.msra.mxu3 %v1921_v36  ;;  %1027 = vmatpush.msra.mxu0 %v1921_v36 }
0x1360   :  { %960 = vmatpush.msra.mxu3 %v1926_v37  ;;  %1028 = vmatpush.msra.mxu0 %v1926_v37 }
0x13d6   :  { %v700_v11 = vpop.f32.mrf.mxu0 }
0x13d7   :  { %v723_v12 = vadd.f32 %v700_v11, %v1787_v33  ;;  %v703_v13 = vadd.f32 %v700_v11, %v1798_v40 }
0x13d9   :  { %725 = vrot.lane.b32.xlu1 %v723_v12, %s1621_s20  ;;  %v1483_v4 = vmul.f32 -1.442695, %v703_v13 }
0x13db   :  { %1567 = vpow2.f32 %v1483_v4 }
0x13dc   :  { %v1957_v44 = vpop.f32.mrf.mxu3 }
0x13e1   :  { %v1568_v5 = vpop.eup %1567 }
0x13e2   :  { %v707_v14 = vadd.f32 1.0, %v1568_v5 }
0x13e4   :  { %1569 = vrcp.f32 %v707_v14  ;;  %v719_v16 = vand.u32 2147483648, %v707_v14  ;;  %vm713_vm3 = vweird.f32 %v707_v14  ;;  %v717_v7 = vand.u32 2147483647, %v707_v14 }
0x13e6   :  { %v720_v17 = vor.u32 1.1754944e-38, %v719_v16  ;;  %vm718_vm6 = vcmp.eq.f32.partialorder %v717_v7, 8.507059e+37 }
0x13ea   :  { %v1570_v6 = vpop.eup %1569 }
0x13eb   :  { %v709_v15 = vmul.f32 %v1570_v6, %v707_v14  ;;  %vm714_vm2 = vweird.f32 %v1570_v6 }
0x13ec   :  { %vm715_vm5 = vmor %vm713_vm3, %vm714_vm2 }
0x13ed   :  { %v710_v2 = vsub.f32 1.0, %v709_v15  ;;  %v774_v15 = vpop.f32.mrf.mxu1 }
0x13ef   :  { %v711_v9 = vmul.f32 %v1570_v6, %v710_v2  ;;  %v775_v2 = vadd.f32 %v1968_v49, %v774_v15 }
0x13f1   :  { %v712_v39 = vadd.f32 %v1570_v6, %v711_v9 }
0x13f3   :  { %v716_v33 = vsel %vm715_vm5, %v1570_v6, %v712_v39 }
0x13f4   :  { %v721_v19 = vsel %vm718_vm6, %v720_v17, %v716_v33 }
0x144b   :  { %v726_v18 = vpop.permute.xlu1 %725 }
0x144c   :  { %v728_v20 = vmul.f32 %v726_v18, %v721_v19 }
0x144e   :  { %730 = vrot.lane.b32.xlu2 %v728_v20, %s1621_s20 }
0x14a8   :  { %v731_v28 = vpop.permute.xlu2 %730 }
0x14a9   :  { %v733_v21 = vadd.f32 %v731_v28, %v1798_v40 }
0x14ab   :  { %1571 = vtanh.f32 %v733_v21 }
0x14b1   :  { %v1572_v22 = vpop.eup %1571 }
0x14b2   :  { %v735_v30 = vsub.f32 %v676_v8, %v1572_v22 }
0x14b4   :  { %737 = vrot.lane.b32.xlu0 %v735_v30, %s1623_s13 }
0x14bc   :  { %842 = vrot.lane.b32.xlu0 %v1521_v41, %s1621_s20 }
0x1526   :  { %v738_v25 = vpop.permute.xlu0 %737 }
0x1527   :  { %v740_v26 = vmul.f32 %v738_v25, %v721_v19 }
0x1529   :  { %742 = vrot.lane.b32.xlu1 %v740_v26, %s1622_s12 }
0x152e   :  { %v1961_v46 = vpop.permute.xlu0 %842 }
0x159b   :  { %v743_v40 = vpop.permute.xlu1 %742 }
0x159c   :  { %v745_v35 = vadd.f32 %v1572_v22, %v743_v40 }
0x159e   :  { %747 = vrot.lane.b32.xlu2 %v745_v35, %s1621_s20 }
0x15f8   :  { %v748_v42 = vpop.permute.xlu2 %747 }
0x15f9   :  { %750 = vst.msk [vmem:[%s2145_s5] sm:$0xff] %vm77_vm4, %v748_v42  ;;  %1491 = vmatmul.msk.f32.gmra.mxu3 %vm77_vm4, %v748_v42 }
0x1600   :  { %v1492_v43 = vld [vmem:[%s2144_s2 + $0x8] sm:$0xff] }
0x1601   :  { %1493 = vmatmul.msk.f32.vlgmr.msrb.gmra.mxu3 %vm77_vm4, %v1492_v43 }
0x1602   :  { %1093 = vmatpush.msrb.mxu3 %v1906_v32 }
0x1604   :  { %1094 = vmatpush.msrb.mxu3 %v1911_v34 }
0x1606   :  { %1095 = vmatpush.msrb.mxu3 %v1921_v36 }
0x1608   :  { %1096 = vmatpush.msrb.mxu3 %v1926_v37 }
0x167c   :  { %v1959_v45 = vpop.f32.mrf.mxu3 }
0x1684   :  { %v817_v47 = vpop.f32.mrf.mxu3 }
0x1685   :  { %v845_v48 = vadd.f32 %v1961_v46, %v817_v47  ;;  %v820_v52 = vadd.f32 %v817_v47, %v772_v51 }
0x1687   :  { %847 = vrot.lane.b32.xlu1 %v845_v48, %s1621_s20  ;;  %v1494_v53 = vmul.f32 -1.442695, %v820_v52 }
0x1689   :  { %1573 = vpow2.f32 %v1494_v53 }
0x168f   :  { %v1574_v54 = vpop.eup %1573 }
0x1690   :  { %v824_v55 = vadd.f32 1.0, %v1574_v54 }
0x1692   :  { %1575 = vrcp.f32 %v824_v55  ;;  %v836_v31 = vand.u32 2147483648, %v824_v55  ;;  %vm830_vm8 = vweird.f32 %v824_v55  ;;  %v834_v38 = vand.u32 2147483647, %v824_v55 }
0x1694   :  { %v837_v60 = vor.u32 1.1754944e-38, %v836_v31  ;;  %vm835_vm10 = vcmp.eq.f32.partialorder %v834_v38, 8.507059e+37 }
0x1698   :  { %v1576_v56 = vpop.eup %1575 }
0x1699   :  { %v826_v27 = vmul.f32 %v1576_v56, %v824_v55  ;;  %vm831_vm7 = vweird.f32 %v1576_v56  ;;  %v777_v55 = vpop.f32.mrf.mxu1 }
0x169a   :  { %vm832_vm9 = vmor %vm830_vm8, %vm831_vm7 }
0x169b   :  { %v827_v57 = vsub.f32 1.0, %v826_v27 }
0x169d   :  { %v828_v29 = vmul.f32 %v1576_v56, %v827_v57 }
0x169f   :  { %v829_v58 = vadd.f32 %v1576_v56, %v828_v29 }
0x16a1   :  { %v833_v59 = vsel %vm832_vm9, %v1576_v56, %v829_v58  ;;  %v778_v56 = vadd.f32 %v1968_v49, %v777_v55 }
0x16a2   :  { %v838_v61 = vsel %vm835_vm10, %v837_v60, %v833_v59 }
0x16f9   :  { %v848_v62 = vpop.permute.xlu1 %847 }
0x16fa   :  { %v850_v63 = vmul.f32 %v848_v62, %v838_v61 }
0x16fc   :  { %852 = vrot.lane.b32.xlu2 %v850_v63, %s1621_s20 }
0x1756   :  { %v853_v0 = vpop.permute.xlu2 %852 }
0x1757   :  { %v855_v1 = vadd.f32 %v853_v0, %v772_v51 }
0x1759   :  { %1577 = vtanh.f32 %v855_v1 }
0x175f   :  { %v1578_v3 = vpop.eup %1577 }
0x1760   :  { %858 = vrot.lane.b32.xlu0 %v1578_v3, %s1621_s20 }
0x17d2   :  { %v859_v8 = vpop.permute.xlu0 %858 }
0x17d3   :  { %v861_v10 = vsub.f32 %v1492_v43, %v859_v8 }
0x17d5   :  { %863 = vrot.lane.b32.xlu1 %v861_v10, %s1622_s12 }
0x1847   :  { %v864_v11 = vpop.permute.xlu1 %863 }
0x1848   :  { %v866_v12 = vmul.f32 %v864_v11, %v838_v61 }
0x184a   :  { %868 = vrot.lane.b32.xlu2 %v866_v12, %s1622_s12 }
0x18a4   :  { %v869_v13 = vpop.permute.xlu2 %868 }
0x18a5   :  { %v1975_v4 = vadd.f32 %v1578_v3, %v869_v13 }
0x18a7   :  { %873 = vrot.lane.b32.xlu0 %v1975_v4, %s1621_s20 }
0x1919   :  { %v874_v5 = vpop.permute.xlu0 %873 }
0x191a   :  { %1495 = vmatmul.msk.f32.vlgmr.msrb.gmra.mxu0 %vm77_vm4, %v874_v5 }
0x191b   :  { %1161 = vmatpush.msrb.mxu0 %v1906_v32 }
0x191d   :  { %1162 = vmatpush.msrb.mxu0 %v1911_v34 }
0x191f   :  { %1163 = vmatpush.msrb.mxu0 %v1921_v36 }
0x1921   :  { %1164 = vmatpush.msrb.mxu0 %v1926_v37 }
0x1997   :  { %v894_v14 = vpop.f32.mrf.mxu0 }
0x1998   :  { %v917_v6 = vadd.f32 %v894_v14, %v1961_v46  ;;  %v897_v9 = vadd.f32 %v894_v14, %v775_v2 }
0x199a   :  { %919 = vrot.lane.b32.xlu1 %v917_v6, %s1621_s20  ;;  %v1496_v39 = vmul.f32 -1.442695, %v897_v9 }
0x199c   :  { %1579 = vpow2.f32 %v1496_v39 }
0x19a2   :  { %v1580_v16 = vpop.eup %1579 }
0x19a3   :  { %v901_v7 = vadd.f32 1.0, %v1580_v16 }
0x19a5   :  { %1581 = vrcp.f32 %v901_v7  ;;  %v913_v28 = vand.u32 2147483648, %v901_v7  ;;  %vm907_vm12 = vweird.f32 %v901_v7  ;;  %v911_v21 = vand.u32 2147483647, %v901_v7 }
0x19a7   :  { %v914_v30 = vor.u32 1.1754944e-38, %v913_v28  ;;  %vm912_vm14 = vcmp.eq.f32.partialorder %v911_v21, 8.507059e+37 }
0x19ab   :  { %v1582_v33 = vpop.eup %1581 }
0x19ac   :  { %v903_v17 = vmul.f32 %v1582_v33, %v901_v7  ;;  %vm908_vm11 = vweird.f32 %v1582_v33  ;;  %v780_v7 = vpop.f32.mrf.mxu1 }
0x19ad   :  { %vm909_vm13 = vmor %vm907_vm12, %vm908_vm11 }
0x19ae   :  { %v904_v18 = vsub.f32 1.0, %v903_v17 }
0x19b0   :  { %v905_v19 = vmul.f32 %v1582_v33, %v904_v18 }
0x19b2   :  { %v906_v20 = vadd.f32 %v1582_v33, %v905_v19 }
0x19b4   :  { %v910_v22 = vsel %vm909_vm13, %v1582_v33, %v906_v20  ;;  %v781_v33 = vadd.f32 %v1968_v49, %v780_v7 }
0x19b5   :  { %v915_v26 = vsel %vm912_vm14, %v914_v30, %v910_v22 }
0x1a0c   :  { %v920_v25 = vpop.permute.xlu1 %919 }
0x1a0d   :  { %v922_v40 = vmul.f32 %v920_v25, %v915_v26 }
0x1a0f   :  { %924 = vrot.lane.b32.xlu2 %v922_v40, %s1621_s20 }
0x1a69   :  { %v925_v35 = vpop.permute.xlu2 %924 }
0x1a6a   :  { %v927_v41 = vadd.f32 %v925_v35, %v775_v2 }
0x1a6c   :  { %1583 = vtanh.f32 %v927_v41 }
0x1a72   :  { %v1584_v42 = vpop.eup %1583 }
0x1a73   :  { %v929_v43 = vsub.f32 %v1975_v4, %v1584_v42 }
0x1a75   :  { %931 = vrot.lane.b32.xlu0 %v929_v43, %s1623_s13 }
0x1ae7   :  { %v932_v47 = vpop.permute.xlu0 %931 }
0x1ae8   :  { %v934_v48 = vmul.f32 %v932_v47, %v915_v26 }
0x1aea   :  { %936 = vrot.lane.b32.xlu1 %v934_v48, %s1622_s12 }
0x1b5c   :  { %v937_v50 = vpop.permute.xlu1 %936 }
0x1b5d   :  { %v1991_v51 = vadd.f32 %v1584_v42, %v937_v50 }
0x1b5f   :  { %941 = vrot.lane.b32.xlu2 %v1991_v51, %s1621_s20 }
0x1bb9   :  { %v942_v52 = vpop.permute.xlu2 %941 }
0x1bba   :  { %1497 = vmatmul.msk.f32.vlgmr.msra.gmra.mxu3 %vm77_vm4, %v942_v52 }
0x1bbb   :  { %1229 = vmatpush.msra.mxu3 %v1906_v32 }
0x1bbd   :  { %1230 = vmatpush.msra.mxu3 %v1911_v34 }
0x1bbf   :  { %1231 = vmatpush.msra.mxu3 %v1921_v36 }
0x1bc1   :  { %1232 = vmatpush.msra.mxu3 %v1926_v37 }
0x1c3d   :  { %v962_v53 = vpop.f32.mrf.mxu3 }
0x1c3e   :  { %v985_v54 = vadd.f32 %v962_v53, %v1961_v46  ;;  %v965_v27 = vadd.f32 %v962_v53, %v778_v56 }
0x1c40   :  { %987 = vrot.lane.b32.xlu0 %v985_v54, %s1621_s20  ;;  %v1498_v57 = vmul.f32 -1.442695, %v965_v27  ;;  %v783_v27 = vpop.f32.mrf.mxu1 }
0x1c42   :  { %1585 = vpow2.f32 %v1498_v57  ;;  %v784_v57 = vadd.f32 %v1968_v49, %v783_v27 }
0x1c48   :  { %v1586_v29 = vpop.eup %1585 }
0x1c49   :  { %v969_v58 = vadd.f32 1.0, %v1586_v29 }
0x1c4b   :  { %1587 = vrcp.f32 %v969_v58  ;;  %v981_v62 = vand.u32 2147483648, %v969_v58  ;;  %vm975_vm0 = vweird.f32 %v969_v58  ;;  %v979_v63 = vand.u32 2147483647, %v969_v58 }
0x1c4d   :  { %v982_v1 = vor.u32 1.1754944e-38, %v981_v62  ;;  %vm980_vm2 = vcmp.eq.f32.partialorder %v979_v63, 8.507059e+37 }
0x1c51   :  { %v1588_v31 = vpop.eup %1587 }
0x1c52   :  { %v971_v38 = vmul.f32 %v1588_v31, %v969_v58  ;;  %vm976_vm15 = vweird.f32 %v1588_v31 }
0x1c53   :  { %vm977_vm1 = vmor %vm975_vm0, %vm976_vm15 }
0x1c54   :  { %v972_v59 = vsub.f32 1.0, %v971_v38 }
0x1c56   :  { %v973_v60 = vmul.f32 %v1588_v31, %v972_v59 }
0x1c58   :  { %v974_v61 = vadd.f32 %v1588_v31, %v973_v60 }
0x1c5a   :  { %v978_v0 = vsel %vm977_vm1, %v1588_v31, %v974_v61 }
0x1c5b   :  { %v983_v8 = vsel %vm980_vm2, %v982_v1, %v978_v0 }
0x1cb2   :  { %v988_v3 = vpop.permute.xlu0 %987 }
0x1cb3   :  { %v990_v10 = vmul.f32 %v988_v3, %v983_v8 }
0x1cb5   :  { %992 = vrot.lane.b32.xlu1 %v990_v10, %s1621_s20 }
0x1d27   :  { %v993_v11 = vpop.permute.xlu1 %992 }
0x1d28   :  { %v995_v12 = vadd.f32 %v993_v11, %v778_v56 }
0x1d2a   :  { %1589 = vtanh.f32 %v995_v12 }
0x1d30   :  { %v1590_v13 = vpop.eup %1589 }
0x1d31   :  { %v997_v5 = vsub.f32 %v1991_v51, %v1590_v13 }
0x1d33   :  { %999 = vrot.lane.b32.xlu2 %v997_v5, %s1623_s13 }
0x1d8d   :  { %v1000_v14 = vpop.permute.xlu2 %999 }
0x1d8e   :  { %v1002_v6 = vmul.f32 %v1000_v14, %v983_v8 }
0x1d90   :  { %1004 = vrot.lane.b32.xlu0 %v1002_v6, %s1622_s12 }
0x1e02   :  { %v1005_v15 = vpop.permute.xlu0 %1004 }
0x1e03   :  { %v2007_v2 = vadd.f32 %v1590_v13, %v1005_v15 }
0x1e05   :  { %1009 = vrot.lane.b32.xlu1 %v2007_v2, %s1621_s20 }
0x1e77   :  { %v1010_v9 = vpop.permute.xlu1 %1009 }
0x1e78   :  { %1499 = vmatmul.msk.f32.vlgmr.msra.gmra.mxu0 %vm77_vm4, %v1010_v9 }
0x1e79   :  { %1297 = vmatpush.msra.mxu0 %v1906_v32 }
0x1e7b   :  { %1298 = vmatpush.msra.mxu0 %v1911_v34 }
0x1e7d   :  { %1299 = vmatpush.msra.mxu0 %v1921_v36 }
0x1e7f   :  { %1300 = vmatpush.msra.mxu0 %v1926_v37 }
0x1ef5   :  { %v1030_v39 = vpop.f32.mrf.mxu0 }
0x1ef6   :  { %v1053_v16 = vadd.f32 %v1030_v39, %v1961_v46  ;;  %v1033_v17 = vadd.f32 %v1030_v39, %v781_v33 }
0x1ef8   :  { %1055 = vrot.lane.b32.xlu2 %v1053_v16, %s1621_s20  ;;  %v1500_v18 = vmul.f32 -1.442695, %v1033_v17 }
0x1efa   :  { %1591 = vpow2.f32 %v1500_v18  ;;  %v786_v18 = vpop.f32.mrf.mxu1 }
0x1f00   :  { %v1592_v19 = vpop.eup %1591 }
0x1f01   :  { %v1037_v20 = vadd.f32 1.0, %v1592_v19  ;;  %v787_v19 = vadd.f32 %v1968_v49, %v786_v18 }
0x1f03   :  { %1593 = vrcp.f32 %v1037_v20  ;;  %v1049_v37 = vand.u32 2147483648, %v1037_v20  ;;  %vm1043_vm5 = vweird.f32 %v1037_v20  ;;  %v1047_v22 = vand.u32 2147483647, %v1037_v20 }
0x1f05   :  { %v1050_v25 = vor.u32 1.1754944e-38, %v1049_v37  ;;  %vm1048_vm7 = vcmp.eq.f32.partialorder %v1047_v22, 8.507059e+37 }
0x1f09   :  { %v1594_v32 = vpop.eup %1593 }
0x1f0a   :  { %v1039_v34 = vmul.f32 %v1594_v32, %v1037_v20  ;;  %vm1044_vm3 = vweird.f32 %v1594_v32 }
0x1f0b   :  { %vm1045_vm6 = vmor %vm1043_vm5, %vm1044_vm3 }
0x1f0c   :  { %v1040_v28 = vsub.f32 1.0, %v1039_v34 }
0x1f0e   :  { %v1041_v36 = vmul.f32 %v1594_v32, %v1040_v28 }
0x1f10   :  { %v1042_v21 = vadd.f32 %v1594_v32, %v1041_v36 }
0x1f12   :  { %v1046_v30 = vsel %vm1045_vm6, %v1594_v32, %v1042_v21 }
0x1f13   :  { %v1051_v40 = vsel %vm1048_vm7, %v1050_v25, %v1046_v30 }
0x1f52   :  { %v1056_v26 = vpop.permute.xlu2 %1055 }
0x1f53   :  { %v1058_v35 = vmul.f32 %v1056_v26, %v1051_v40 }
0x1f55   :  { %1060 = vrot.lane.b32.xlu0 %v1058_v35, %s1621_s20 }
0x1fc7   :  { %v1061_v41 = vpop.permute.xlu0 %1060 }
0x1fc8   :  { %v1063_v42 = vadd.f32 %v1061_v41, %v781_v33 }
0x1fca   :  { %1595 = vtanh.f32 %v1063_v42 }
0x1fd0   :  { %v1596_v43 = vpop.eup %1595 }
0x1fd1   :  { %v1065_v47 = vsub.f32 %v2007_v2, %v1596_v43 }
0x1fd3   :  { %1067 = vrot.lane.b32.xlu1 %v1065_v47, %s1623_s13 }
0x2045   :  { %v1068_v48 = vpop.permute.xlu1 %1067 }
0x2046   :  { %v1070_v50 = vmul.f32 %v1068_v48, %v1051_v40 }
0x2048   :  { %1072 = vrot.lane.b32.xlu2 %v1070_v50, %s1622_s12 }
0x20a2   :  { %v1073_v52 = vpop.permute.xlu2 %1072 }
0x20a3   :  { %v2023_v53 = vadd.f32 %v1596_v43, %v1073_v52 }
0x20a5   :  { %1077 = vrot.lane.b32.xlu0 %v2023_v53, %s1621_s20 }
0x2117   :  { %v1078_v54 = vpop.permute.xlu0 %1077 }
0x2118   :  { %1501 = vmatmul.msk.f32.vlgmr.msrb.gmra.mxu3 %vm77_vm4, %v1078_v54 }
0x219b   :  { %v1098_v55 = vpop.f32.mrf.mxu3 }
0x219c   :  { %v1121_v56 = vadd.f32 %v1098_v55, %v1961_v46  ;;  %v1101_v29 = vadd.f32 %v1098_v55, %v784_v57 }
0x219e   :  { %1123 = vrot.lane.b32.xlu1 %v1121_v56, %s1621_s20  ;;  %v1502_v58 = vmul.f32 -1.442695, %v1101_v29 }
0x21a0   :  { %1597 = vpow2.f32 %v1502_v58 }
0x21a6   :  { %v1598_v31 = vpop.eup %1597 }
0x21a7   :  { %v1105_v38 = vadd.f32 1.0, %v1598_v31  ;;  %v790_v31 = vadd.f32 %v1968_v49, %v1957_v44 }
0x21a9   :  { %1599 = vrcp.f32 %v1105_v38  ;;  %v1117_v0 = vand.u32 2147483648, %v1105_v38  ;;  %vm1111_vm9 = vweird.f32 %v1105_v38  ;;  %v1115_v1 = vand.u32 2147483647, %v1105_v38 }
0x21ab   :  { %v1118_v8 = vor.u32 1.1754944e-38, %v1117_v0  ;;  %vm1116_vm11 = vcmp.eq.f32.partialorder %v1115_v1, 8.507059e+37 }
0x21af   :  { %v1600_v59 = vpop.eup %1599 }
0x21b0   :  { %v1107_v60 = vmul.f32 %v1600_v59, %v1105_v38  ;;  %vm1112_vm8 = vweird.f32 %v1600_v59 }
0x21b1   :  { %vm1113_vm10 = vmor %vm1111_vm9, %vm1112_vm8  ;;  %vm1439_vm9 = vcmask 7168  }
0x21b2   :  { %v1108_v61 = vsub.f32 1.0, %v1107_v60 }
0x21b4   :  { %v1109_v62 = vmul.f32 %v1600_v59, %v1108_v61 }
0x21b6   :  { %v1110_v63 = vadd.f32 %v1600_v59, %v1109_v62 }
0x21b8   :  { %v1114_v3 = vsel %vm1113_vm10, %v1600_v59, %v1110_v63 }
0x21b9   :  { %v1119_v11 = vsel %vm1116_vm11, %v1118_v8, %v1114_v3 }
0x2210   :  { %v1124_v10 = vpop.permute.xlu1 %1123 }
0x2211   :  { %v1126_v12 = vmul.f32 %v1124_v10, %v1119_v11 }
0x2213   :  { %1128 = vrot.lane.b32.xlu2 %v1126_v12, %s1621_s20 }
0x226d   :  { %v1129_v13 = vpop.permute.xlu2 %1128 }
0x226e   :  { %v1131_v5 = vadd.f32 %v1129_v13, %v784_v57 }
0x2270   :  { %1601 = vtanh.f32 %v1131_v5 }
0x2276   :  { %v1602_v14 = vpop.eup %1601 }
0x2277   :  { %v1133_v6 = vsub.f32 %v2023_v53, %v1602_v14 }
0x2279   :  { %1135 = vrot.lane.b32.xlu0 %v1133_v6, %s1623_s13 }
0x22eb   :  { %v1136_v15 = vpop.permute.xlu0 %1135 }
0x22ec   :  { %v1138_v9 = vmul.f32 %v1136_v15, %v1119_v11 }
0x22ee   :  { %1140 = vrot.lane.b32.xlu1 %v1138_v9, %s1622_s12 }
0x2360   :  { %v1141_v39 = vpop.permute.xlu1 %1140 }
0x2361   :  { %v2035_v16 = vadd.f32 %v1602_v14, %v1141_v39 }
0x2363   :  { %1145 = vrot.lane.b32.xlu2 %v2035_v16, %s1621_s20 }
0x23bd   :  { %v1146_v7 = vpop.permute.xlu2 %1145 }
0x23be   :  { %1503 = vmatmul.msk.f32.vlgmr.msrb.gmra.mxu0 %vm77_vm4, %v1146_v7 }
0x243b   :  { %v1166_v33 = vpop.f32.mrf.mxu0 }
0x243c   :  { %v1189_v17 = vadd.f32 %v1166_v33, %v1961_v46  ;;  %v1169_v20 = vadd.f32 %v1166_v33, %v787_v19 }
0x243e   :  { %1191 = vrot.lane.b32.xlu0 %v1189_v17, %s1621_s20  ;;  %v1504_v32 = vmul.f32 -1.442695, %v1169_v20 }
0x2440   :  { %1603 = vpow2.f32 %v1504_v32  ;;  %v793_v32 = vadd.f32 %v1968_v49, %v1959_v45 }
0x2446   :  { %v1604_v34 = vpop.eup %1603 }
0x2447   :  { %v1173_v28 = vadd.f32 1.0, %v1604_v34 }
0x2449   :  { %1605 = vrcp.f32 %v1173_v28  ;;  %v1185_v25 = vand.u32 2147483648, %v1173_v28  ;;  %vm1179_vm13 = vweird.f32 %v1173_v28  ;;  %v1183_v26 = vand.u32 2147483647, %v1173_v28 }
0x244b   :  { %v1186_v35 = vor.u32 1.1754944e-38, %v1185_v25  ;;  %vm1184_vm15 = vcmp.eq.f32.partialorder %v1183_v26, 8.507059e+37 }
0x244f   :  { %v1606_v36 = vpop.eup %1605 }
0x2450   :  { %v1175_v21 = vmul.f32 %v1606_v36, %v1173_v28  ;;  %vm1180_vm12 = vweird.f32 %v1606_v36 }
0x2451   :  { %vm1181_vm14 = vmor %vm1179_vm13, %vm1180_vm12 }
0x2452   :  { %v1176_v37 = vsub.f32 1.0, %v1175_v21 }
0x2454   :  { %v1177_v22 = vmul.f32 %v1606_v36, %v1176_v37 }
0x2456   :  { %v1178_v30 = vadd.f32 %v1606_v36, %v1177_v22 }
0x2458   :  { %v1182_v40 = vsel %vm1181_vm14, %v1606_v36, %v1178_v30 }
0x2459   :  { %v1187_v42 = vsel %vm1184_vm15, %v1186_v35, %v1182_v40 }
0x24b0   :  { %v1192_v41 = vpop.permute.xlu0 %1191 }
0x24b1   :  { %v1194_v43 = vmul.f32 %v1192_v41, %v1187_v42 }
0x24b3   :  { %1196 = vrot.lane.b32.xlu1 %v1194_v43, %s1621_s20  ;;  %v1522_v43 = vld [vmem:[%s2141_s3 + $0x86] ss:$0 sm:$0xff] }
0x2525   :  { %v1197_v47 = vpop.permute.xlu1 %1196 }
0x2526   :  { %v1199_v48 = vadd.f32 %v1197_v47, %v787_v19 }
0x2528   :  { %1607 = vtanh.f32 %v1199_v48 }
0x252e   :  { %v1608_v50 = vpop.eup %1607 }
0x252f   :  { %v1201_v52 = vsub.f32 %v2035_v16, %v1608_v50 }
0x2531   :  { %1203 = vrot.lane.b32.xlu2 %v1201_v52, %s1623_s13 }
0x258b   :  { %v1204_v54 = vpop.permute.xlu2 %1203 }
0x258c   :  { %v1206_v55 = vmul.f32 %v1204_v54, %v1187_v42 }
0x258e   :  { %1208 = vrot.lane.b32.xlu0 %v1206_v55, %s1622_s12 }
0x2600   :  { %v1209_v56 = vpop.permute.xlu0 %1208 }
0x2601   :  { %v2047_v27 = vadd.f32 %v1608_v50, %v1209_v56 }
0x2603   :  { %1213 = vrot.lane.b32.xlu1 %v2047_v27, %s1621_s20 }
0x2675   :  { %v1214_v57 = vpop.permute.xlu1 %1213 }
0x2676   :  { %1505 = vmatmul.msk.f32.vlgmr.msra.gmra.mxu3 %vm77_vm4, %v1214_v57 }
0x26f9   :  { %v1234_v29 = vpop.f32.mrf.mxu3 }
0x26fa   :  { %v1257_v58 = vadd.f32 %v1234_v29, %v1961_v46  ;;  %v1237_v38 = vadd.f32 %v1234_v29, %v790_v31 }
0x26fc   :  { %1259 = vrot.lane.b32.xlu2 %v1257_v58, %s1621_s20  ;;  %v1506_v59 = vmul.f32 -1.442695, %v1237_v38 }
0x26fe   :  { %1609 = vpow2.f32 %v1506_v59 }
0x2704   :  { %v1610_v60 = vpop.eup %1609 }
0x2705   :  { %v1241_v61 = vadd.f32 1.0, %v1610_v60 }
0x2707   :  { %1611 = vrcp.f32 %v1241_v61  ;;  %v1253_v8 = vand.u32 2147483648, %v1241_v61  ;;  %vm1247_vm1 = vweird.f32 %v1241_v61  ;;  %v1251_v10 = vand.u32 2147483647, %v1241_v61 }
0x2709   :  { %v1254_v12 = vor.u32 1.1754944e-38, %v1253_v8  ;;  %vm1252_vm3 = vcmp.eq.f32.partialorder %v1251_v10, 8.507059e+37 }
0x270d   :  { %v1612_v62 = vpop.eup %1611 }
0x270e   :  { %v1243_v63 = vmul.f32 %v1612_v62, %v1241_v61  ;;  %vm1248_vm0 = vweird.f32 %v1612_v62 }
0x270f   :  { %vm1249_vm2 = vmor %vm1247_vm1, %vm1248_vm0 }
0x2710   :  { %v1244_v0 = vsub.f32 1.0, %v1243_v63 }
0x2712   :  { %v1245_v1 = vmul.f32 %v1612_v62, %v1244_v0 }
0x2714   :  { %v1246_v3 = vadd.f32 %v1612_v62, %v1245_v1 }
0x2716   :  { %v1250_v11 = vsel %vm1249_vm2, %v1612_v62, %v1246_v3 }
0x2717   :  { %v1255_v13 = vsel %vm1252_vm3, %v1254_v12, %v1250_v11  ;;  %v1524_v12 = vld [vmem:[%s2141_s3 + $0x8d] ss:$0 sm:$0xff] }
0x2756   :  { %v1260_v44 = vpop.permute.xlu2 %1259 }
0x2757   :  { %v1262_v5 = vmul.f32 %v1260_v44, %v1255_v13 }
0x2759   :  { %1264 = vrot.lane.b32.xlu0 %v1262_v5, %s1621_s20 }
0x27cb   :  { %v1265_v14 = vpop.permute.xlu0 %1264 }
0x27cc   :  { %v1267_v6 = vadd.f32 %v1265_v14, %v790_v31 }
0x27ce   :  { %1613 = vtanh.f32 %v1267_v6 }
0x27d4   :  { %v1614_v15 = vpop.eup %1613 }
0x27d5   :  { %v1269_v9 = vsub.f32 %v2047_v27, %v1614_v15 }
0x27d7   :  { %1271 = vrot.lane.b32.xlu1 %v1269_v9, %s1623_s13 }
0x2849   :  { %v1272_v39 = vpop.permute.xlu1 %1271 }
0x284a   :  { %v1274_v7 = vmul.f32 %v1272_v39, %v1255_v13 }
0x284c   :  { %1276 = vrot.lane.b32.xlu2 %v1274_v7, %s1622_s12 }
0x28a6   :  { %v1277_v33 = vpop.permute.xlu2 %1276 }
0x28a7   :  { %v1279_v17 = vadd.f32 %v1614_v15, %v1277_v33 }
0x28a9   :  { %1281 = vrot.lane.b32.xlu0 %v1279_v17, %s1621_s20 }
0x291b   :  { %v1282_v18 = vpop.permute.xlu0 %1281 }
0x291c   :  { %1507 = vmatmul.msk.f32.vlgmr.msra.gmra.mxu0 %vm77_vm4, %v1282_v18 }
0x2999   :  { %v1302_v19 = vpop.f32.mrf.mxu0 }
0x299a   :  { %v1325_v20 = vadd.f32 %v1302_v19, %v1961_v46  ;;  %v1305_v34 = vadd.f32 %v1302_v19, %v793_v32 }
0x299c   :  { %1327 = vrot.lane.b32.xlu1 %v1325_v20, %s1621_s20  ;;  %v1508_v28 = vmul.f32 -1.442695, %v1305_v34 }
0x299e   :  { %1615 = vpow2.f32 %v1508_v28 }
0x29a4   :  { %v1616_v36 = vpop.eup %1615 }
0x29a5   :  { %v1309_v21 = vadd.f32 1.0, %v1616_v36 }
0x29a7   :  { %1617 = vrcp.f32 %v1309_v21  ;;  %v1321_v40 = vand.u32 2147483648, %v1309_v21  ;;  %vm1315_vm6 = vweird.f32 %v1309_v21  ;;  %v1319_v46 = vand.u32 2147483647, %v1309_v21 }
0x29a9   :  { %v1322_v41 = vor.u32 1.1754944e-38, %v1321_v40  ;;  %vm1320_vm8 = vcmp.eq.f32.partialorder %v1319_v46, 8.507059e+37 }
0x29ad   :  { %v1618_v37 = vpop.eup %1617 }
0x29ae   :  { %v1311_v22 = vmul.f32 %v1618_v37, %v1309_v21  ;;  %vm1316_vm5 = vweird.f32 %v1618_v37 }
0x29af   :  { %vm1317_vm7 = vmor %vm1315_vm6, %vm1316_vm5 }
0x29b0   :  { %v1312_v30 = vsub.f32 1.0, %v1311_v22 }
0x29b2   :  { %v1313_v25 = vmul.f32 %v1618_v37, %v1312_v30 }
0x29b4   :  { %v1314_v26 = vadd.f32 %v1618_v37, %v1313_v25 }
0x29b6   :  { %v1318_v35 = vsel %vm1317_vm7, %v1618_v37, %v1314_v26 }
0x29b7   :  { %v1323_v49 = vsel %vm1320_vm8, %v1322_v41, %v1318_v35 }
0x2a0e   :  { %v1328_v45 = vpop.permute.xlu1 %1327 }
0x2a0f   :  { %v1330_v42 = vmul.f32 %v1328_v45, %v1323_v49 }
0x2a11   :  { %1332 = vrot.lane.b32.xlu2 %v1330_v42, %s1621_s20 }
0x2a19   :  { %1356 = vrot.lane.b32.xlu2 %v1522_v43, %s1621_s20 }
0x2a6b   :  { %v1333_v47 = vpop.permute.xlu2 %1332 }
0x2a6c   :  { %v1335_v48 = vadd.f32 %v1333_v47, %v793_v32 }
0x2a6e   :  { %1619 = vtanh.f32 %v1335_v48 }
0x2a73   :  { %v1357_v50 = vpop.permute.xlu2 %1356 }
0x2a74   :  { %v1620_v52 = vpop.eup %1619  ;;  %v1361_v54 = vmul.f32 %v1357_v50, %v2007_v2  ;;  %v1360_v55 = vmul.f32 %v1357_v50, %v1991_v51  ;;  %v1364_v57 = vmul.f32 %v1357_v50, %v2047_v27  ;;  %v1363_v29 = vmul.f32 %v1357_v50, %v2035_v16  ;;  %v1523_v27 = vld [vmem:[%s2141_s3 + $0x87] ss:$0 sm:$0xff] }
0x2a75   :  { %v1337_v56 = vsub.f32 %v1279_v17, %v1620_v52  ;;  %v1359_v58 = vmul.f32 %v1357_v50, %v1975_v4  ;;  %v1362_v51 = vmul.f32 %v1357_v50, %v2023_v53  ;;  %v1365_v2 = vmul.f32 %v1357_v50, %v1279_v17 }
0x2a76   :  { %1379 = vrot.lane.b32.xlu2 %v1361_v54, %s1621_s20  ;;  %1377 = vrot.lane.b32.xlu1 %v1360_v55, %s1621_s20  ;;  %v102_v4 = vmul.f32 %v1523_v27, %v75_v24 }
0x2a77   :  { %1339 = vrot.lane.b32.xlu0 %v1337_v56, %s1623_s13 }
0x2a78   :  { %v103_v16 = vsel %vm77_vm4, %v102_v4, 0.0 }
0x2a7e   :  { %1385 = vrot.lane.b32.xlu2 %v1364_v57, %s1621_s20  ;;  %1383 = vrot.lane.b32.xlu1 %v1363_v29, %s1621_s20 }
0x2a7f   :  { %1375 = vrot.lane.b32.xlu0 %v1359_v58, %s1621_s20 }
0x2a87   :  { %1381 = vrot.lane.b32.xlu0 %v1362_v51, %s1621_s20 }
0x2a8f   :  { %1387 = vrot.lane.b32.xlu0 %v1365_v2, %s1621_s20 }
0x2aa7   :  { %104 = vadd.xlane.f32.xlu2 %v103_v16 }
0x2ad0   :  { %v1380_v31 = vpop.permute.xlu2 %1379 }
0x2ad1   :  { %v1405_v38 = vsel %vm77_vm4, %v1380_v31, 0.0 }
0x2ad2   :  { %1406 = vadd.xlane.f32.xlu2 %v1405_v38 }
0x2ad8   :  { %v1386_v10 = vpop.permute.xlu2 %1385 }
0x2ad9   :  { %v1414_v25 = vsel %vm77_vm4, %v1386_v10, 0.0 }
0x2ae8   :  { %v1378_v60 = vpop.permute.xlu1 %1377 }
0x2ae9   :  { %v1340_v53 = vpop.permute.xlu0 %1339  ;;  %v1402_v8 = vsel %vm77_vm4, %v1378_v60, 0.0 }
0x2aea   :  { %v1342_v59 = vmul.f32 %v1340_v53, %v1323_v49 }
0x2aec   :  { %1344 = vrot.lane.b32.xlu1 %v1342_v59, %s1622_s12 }
0x2af0   :  { %v1384_v63 = vpop.permute.xlu1 %1383 }
0x2af1   :  { %v1376_v61 = vpop.permute.xlu0 %1375  ;;  %v1411_v23 = vsel %vm77_vm4, %v1384_v63, 0.0 }
0x2af2   :  { %v1399_v62 = vsel %vm77_vm4, %v1376_v61, 0.0 }
0x2af3   :  { %1400 = vadd.xlane.f32.xlu0 %v1399_v62 }
0x2af9   :  { %v1382_v0 = vpop.permute.xlu0 %1381 }
0x2afa   :  { %v1408_v24 = vsel %vm77_vm4, %v1382_v0, 0.0 }
0x2afb   :  { %1412 = vadd.xlane.f32.xlu0 %v1411_v23  ;;  %1409 = vadd.xlane.f32.xlu2 %v1408_v24 }
0x2b01   :  { %v1388_v1 = vpop.permute.xlu0 %1387 }
0x2b02   :  { %v1417_v3 = vsel %vm77_vm4, %v1388_v1, 0.0 }
0x2b03   :  { %1418 = vadd.xlane.f32.xlu2 %v1417_v3 }
0x2b16   :  { %1403 = vadd.xlane.f32.xlu1 %v1402_v8 }
0x2b1a   :  { %v105_v11 = vpop.xlane.xlu2 %104 }
0x2b1b   :  { %v107_v44 = vadd.f32 %v1524_v12, %v105_v11 }
0x2b45   :  { %v1407_v13 = vpop.xlane.xlu2 %1406 }
0x2b46   :  { %v1425_v5 = vadd.f32 %v1407_v13, %v107_v44 }
0x2b48   :  { %v1433_v14 = vmax.f32 %v1425_v5, 0.0 }
0x2b4a   :  { %1442 = vst.msk [vmem:[%s2146_s4 + $0x10] sm:$0xff] %vm1439_vm9, %v1433_v14 }
0x2b5e   :  { %v1345_v6 = vpop.permute.xlu1 %1344 }
0x2b5f   :  { %v1347_v15 = vadd.f32 %v1620_v52, %v1345_v6 }
0x2b61   :  { %v1366_v9 = vmul.f32 %v1357_v50, %v1347_v15 }
0x2b63   :  { %1389 = vrot.lane.b32.xlu1 %v1366_v9, %s1621_s20 }
0x2b66   :  { %v1401_v39 = vpop.xlane.xlu0 %1400 }
0x2b67   :  { %v1423_v7 = vadd.f32 %v1401_v39, %v107_v44 }
0x2b69   :  { %v1431_v33 = vmax.f32 %v1423_v7, 0.0 }
0x2b6b   :  { %1440 = vst.msk [vmem:[%s2146_s4] sm:$0xff] %vm1439_vm9, %v1431_v33 }
0x2b6e   :  { %v1410_v17 = vpop.xlane.xlu2 %1409  ;;  %v1413_v18 = vpop.xlane.xlu0 %1412 }
0x2b6f   :  { %v1426_v19 = vadd.f32 %v1410_v17, %v107_v44  ;;  %v1427_v20 = vadd.f32 %v1413_v18, %v107_v44 }
0x2b71   :  { %v1434_v32 = vmax.f32 %v1426_v19, 0.0  ;;  %v1435_v34 = vmax.f32 %v1427_v20, 0.0 }
0x2b73   :  { %1443 = vst.msk [vmem:[%s2146_s4 + $0x18] sm:$0xff] %vm1439_vm9, %v1434_v32 }
0x2b74   :  { %1444 = vst.msk [vmem:[%s2146_s4 + $0x20] sm:$0xff] %vm1439_vm9, %v1435_v34 }
0x2b76   :  { %v1419_v28 = vpop.xlane.xlu2 %1418 }
0x2b77   :  { %v1429_v36 = vadd.f32 %v1419_v28, %v107_v44 }
0x2b79   :  { %v1437_v21 = vmax.f32 %v1429_v36, 0.0 }
0x2b7b   :  { %1446 = vst.msk [vmem:[%s2146_s4 + $0x30] sm:$0xff] %vm1439_vm9, %v1437_v21 }
0x2b89   :  { %v1404_v37 = vpop.xlane.xlu1 %1403 }
0x2b8a   :  { %v1424_v22 = vadd.f32 %v1404_v37, %v107_v44 }
0x2b8c   :  { %v1432_v30 = vmax.f32 %v1424_v22, 0.0 }
0x2b8d   :  { %1415 = vadd.xlane.f32.xlu1 %v1414_v25 }
0x2b8e   :  { %1441 = vst.msk [vmem:[%s2146_s4 + $0x8] sm:$0xff] %vm1439_vm9, %v1432_v30 }
0x2ba6   :  { %1349 = vrot.lane.b32.xlu1 %v1347_v15, %s1621_s20 }
0x2bd5   :  { %v1390_v26 = vpop.permute.xlu1 %1389 }
0x2bd6   :  { %v1420_v40 = vsel %vm77_vm4, %v1390_v26, 0.0 }
0x2bd7   :  { %1421 = vadd.xlane.f32.xlu0 %v1420_v40 }
0x2c00   :  { %v1416_v46 = vpop.xlane.xlu1 %1415 }
0x2c01   :  { %v1428_v35 = vadd.f32 %v1416_v46, %v107_v44 }
0x2c03   :  { %v1436_v41 = vmax.f32 %v1428_v35, 0.0 }
0x2c05   :  { %1445 = vst.msk [vmem:[%s2146_s4 + $0x28] sm:$0xff] %vm1439_vm9, %v1436_v41 }
0x2c18   :  { %v1350_v45 = vpop.permute.xlu1 %1349 }
0x2c19   :  { %1509 = vst.msk [vmem:[%s2145_s5 + $0x8] sm:$0xff] %vm77_vm4, %v1350_v45 }
0x2c4a   :  { %v1422_v49 = vpop.xlane.xlu0 %1421 }
0x2c4b   :  { %v1430_v42 = vadd.f32 %v1422_v49, %v107_v44 }
0x2c4d   :  { %v1438_v43 = vmax.f32 %v1430_v42, 0.0 }
0x2c4f   :  { %1447 = vst.msk [vmem:[%s2146_s4 + $0x38] sm:$0xff] %vm1439_vm9, %v1438_v43 }

</bundles_post_ra>
